<compile_context>
chip_gen: v7x
topology: tpu7x:2x2x1
jax: 0.10.0
libtpu: 0.0.40
codegen_flags: <defaults>
</compile_context>

<pallas_src>
import numpy as np

import jax
import jax.numpy as jnp
from jax.experimental import pallas as pl
from jax.experimental.pallas import tpu as pltpu


def _round_up(x, m):
    return (x + m - 1) // m * m


def _compute_locations(H, W):
    """Matches DynamicHead.compute_locations + the normalisation in the torch
    forward: `locations[:0] /= W` is an empty slice (no-op) and
    `locations[:1] /= H` selects the whole (1, 2, H, W) tensor, i.e. BOTH
    coordinate channels end up divided by H (faithful to the torch source).
    Returns (2, H, W): channel 0 = x, channel 1 = y."""
    shift_y, shift_x = jnp.meshgrid(
        jnp.arange(H, dtype=jnp.float32),
        jnp.arange(W, dtype=jnp.float32),
        indexing="ij",
    )
    locations = jnp.stack([shift_x, shift_y], axis=0)  # (2, H, W)
    return locations / jnp.float32(H)


def parse_dynamic_params(params, mid_channels, weight_nums, bias_nums,
                         out_channels=1, mask=True):
    """params: (N_pos, sum(weight_nums)+sum(bias_nums)).
    Returns weights[l]: (N_pos, out_l, in_l), biases[l]: (N_pos, out_l, 1)."""
    n_pos = params.shape[0]
    n_layers = len(weight_nums)
    sizes = list(weight_nums) + list(bias_nums)
    offs = np.cumsum([0] + sizes)
    splits = [params[:, offs[i]:offs[i + 1]] for i in range(len(sizes))]
    w_splits, b_splits = splits[:n_layers], list(splits[n_layers:])
    if mask:
        b_splits[-1] = b_splits[-1] - 2.19
    weights, biases = [], []
    for l in range(n_layers):
        out_c = mid_channels if l < n_layers - 1 else out_channels
        in_c = weight_nums[l] // out_c
        weights.append(w_splits[l].reshape(n_pos, out_c, in_c))
        biases.append(b_splits[l].reshape(n_pos, out_c, 1))
    return weights, biases


def _make_dynamic_head_kernel(num_layers, nb, out_channels):
    vpu_last = (out_channels == 1)

    def kernel(i2b_ref, x_ref, *rest):
        # i2b_ref : SMEM (N_pos_pad,) int32  instance -> image map (prefetched)
        # x_ref   : VMEM (B, C_pad, TL) bf16 feature slab for this pixel tile
        # rest    : resident params (w0, b0, w1, b1, ...), then o_ref
        o_ref = rest[-1]
        p_refs = rest[:-1]
        blk = pl.program_id(1)
        for j in range(nb):                       # static unroll: NB instances/step
            n = blk * nb + j                      # global instance id
            b_idx = i2b_ref[n]                    # which image this instance uses
            h = x_ref[b_idx]                      # (C_pad, TL) bf16
            for l in range(num_layers):
                w_ref = p_refs[2 * l]
                b_ref = p_refs[2 * l + 1]
                is_last = (l == num_layers - 1)
                if is_last and vpu_last:
                    # last layer (out=1): VPU broadcast-mul + sublane reduce,
                    # avoids an M=1 MXU pass per instance.
                    w = w_ref[n]                                    # (in, 1) f32
                    b = b_ref[n]                                    # (1, 1)  f32
                    hf = h.astype(jnp.float32)
                    row = jnp.sum(w * hf, axis=0, keepdims=True) + b  # (1, TL)
                    o_ref[pl.ds(j, 1), :] = row
                else:
                    w = w_ref[n]                                    # (out, in) bf16
                    b = b_ref[n]                                    # (out, 1)  f32
                    acc = jnp.dot(w, h.astype(jnp.bfloat16),
                                  preferred_element_type=jnp.float32) + b
                    if is_last:
                        o_ref[j] = acc                              # (out, TL)
                    else:
                        h = jnp.maximum(acc, 0.0)                   # stays f32
    return kernel


def dynamic_head_pallas(x_feat, inst2batch, weights, biases, *,
                        out_channels, nb=8, tl_max=1024):
    """x_feat: (B, C_in, H, W) f32 features with coords already concatenated.
    inst2batch: (N_pos,) int instance -> batch-image map (host-concrete).
    Returns padded output: (N_pos_pad, Mpad) f32 if out_channels == 1 else
    (N_pos_pad, out_channels, Mpad) f32."""
    B, C_in, H, W = x_feat.shape
    N_pos = int(weights[0].shape[0])
    num_layers = len(weights)

    # ---- pixel tile: lane-dense; a divisor of M when possible so Mpad == M.
    M = H * W
    if M % 128 == 0:
        tl = 128
        for cand in (1024, 512, 256, 128):
            if cand <= tl_max and M % cand == 0:
                tl = cand
                break
        Mpad = M
    else:
        tl = min(tl_max, _round_up(M, 128))
        Mpad = _round_up(M, tl)
    num_tiles = Mpad // tl

    # ---- instance blocking (NB instances per grid step, multiple of 8 so the
    #      (NB, TL) output block is sublane-aligned).
    nb = max(8, (int(nb) // 8) * 8)
    N_pad = _round_up(N_pos, nb)
    n_blocks = N_pad // nb

    # ---- feature slab: (B, C_pad, Mpad) bf16, channels on sublanes, pixels on lanes.
    C_pad = _round_up(C_in, 16)                     # bf16 sublane tile = 16
    x_flat = x_feat.reshape(B, C_in, M)
    x_flat = jnp.pad(x_flat, ((0, 0), (0, C_pad - C_in), (0, Mpad - M)))
    x_flat = x_flat.astype(jnp.bfloat16)

    # ---- instance -> image map (padded instances point at image 0).
    i2b = jnp.pad(jnp.asarray(inst2batch, jnp.int32), (0, N_pad - N_pos))

    # ---- specs: feature slab indexed only by the pixel tile; params fully resident.
    feat_spec = pl.BlockSpec((B, C_pad, tl), lambda t, b_, i2b_ref: (0, 0, t))
    const_map3 = lambda t, b_, i2b_ref: (0, 0, 0)

    in_specs = [feat_spec]
    flat_params = []
    for l in range(num_layers):
        w, b = weights[l], biases[l]
        in_l = int(w.shape[2])
        if l == 0 and C_pad != in_l:                # zero-pad layer-0 K dim
            w = jnp.pad(w, ((0, 0), (0, 0), (0, C_pad - in_l)))
        # pad instance axis with zeros
        w = jnp.pad(w, ((0, N_pad - N_pos), (0, 0), (0, 0)))
        b = jnp.pad(b, ((0, N_pad - N_pos), (0, 0), (0, 0)))
        is_last = (l == num_layers - 1)
        if is_last and out_channels == 1:
            # pre-transposed (N_pad, in, 1) f32 for the in-kernel VPU path
            w_arr = jnp.transpose(w, (0, 2, 1)).astype(jnp.float32)
        else:
            w_arr = w.astype(jnp.bfloat16)
        b_arr = b.astype(jnp.float32)               # (N_pad, out_l, 1)
        in_specs.append(pl.BlockSpec(w_arr.shape, const_map3))
        in_specs.append(pl.BlockSpec(b_arr.shape, const_map3))
        flat_params += [w_arr, b_arr]

    if out_channels == 1:
        out_shape = jax.ShapeDtypeStruct((N_pad, Mpad), jnp.float32)
        out_specs = pl.BlockSpec((nb, tl), lambda t, b_, i2b_ref: (b_, t))
    else:
        out_shape = jax.ShapeDtypeStruct((N_pad, out_channels, Mpad), jnp.float32)
        out_specs = pl.BlockSpec((nb, out_channels, tl),
                                 lambda t, b_, i2b_ref: (b_, 0, t))

    kernel = _make_dynamic_head_kernel(num_layers, nb, out_channels)

    layer_dims = []
    for l in range(num_layers):
        out_l = int(weights[l].shape[1])
        in_l = C_pad if l == 0 else int(weights[l].shape[2])
        layer_dims.append((out_l, in_l))
    flops = 2 * N_pad * Mpad * sum(o * i for o, i in layer_dims)
    bytes_accessed = (
        B * C_pad * Mpad * 2                                        # feature reads (once/tile)
        + sum(int(p.size) * int(p.dtype.itemsize) for p in flat_params)
        + N_pad * out_channels * Mpad * 4                           # output writes
    )
    cost = pl.CostEstimate(flops=flops, transcendentals=0,
                           bytes_accessed=bytes_accessed)

    return pl.pallas_call(
        kernel,
        out_shape=out_shape,
        grid_spec=pltpu.PrefetchScalarGridSpec(
            num_scalar_prefetch=1,
            grid=(num_tiles, n_blocks),       # pixel tile outer -> feature slab reused
            in_specs=in_specs,
            out_specs=out_specs,
        ),
        compiler_params=pltpu.CompilerParams(
            dimension_semantics=("parallel", "parallel"),
            vmem_limit_bytes=32 * 1024 * 1024,
        ),
        cost_estimate=cost,
    )(i2b, x_flat, *flat_params)


def dynamic_head_forward(x, cond_head_params, num_ins, *, mid_channels,
                         weight_nums, bias_nums, out_channels=1,
                         disable_coords=False, is_mask=True,
                         nb=8, tl_max=1024):
    """Matches DynamicHead.forward; returns (N_pos*out_channels, H, W) f32."""
    B, _, H, W = x.shape
    if not disable_coords:
        loc = _compute_locations(H, W)                        # (2, H, W)
        loc = jnp.broadcast_to(loc[None], (B, 2, H, W))
        x = jnp.concatenate([loc.astype(x.dtype), x], axis=1)

    weights, biases = parse_dynamic_params(
        cond_head_params, mid_channels, weight_nums, bias_nums,
        out_channels=out_channels, mask=is_mask)

    # TODO(synk): num_ins must be host-concrete; fully dynamic instance counts
    # would need a masked formulation to be jit-traceable.
    inst2batch = np.repeat(np.arange(B, dtype=np.int32), np.asarray(num_ins))
    N_pos = int(inst2batch.shape[0])

    y = dynamic_head_pallas(x, inst2batch, weights, biases,
                            out_channels=out_channels, nb=nb, tl_max=tl_max)
    M = H * W
    if out_channels == 1:
        # No pixel crop when M % 128 == 0 (Mpad == M); instance crop only when
        # N_pos is not a multiple of the instance block.
        return y[:N_pos, :M].reshape(N_pos, H, W)
    return y[:N_pos, :, :M].reshape(N_pos * out_channels, H, W)


def dynamic_head_reference(x, cond_head_params, num_ins, *, mid_channels,
                           weight_nums, bias_nums, out_channels=1,
                           disable_coords=False, is_mask=True):
    """Pure-JAX f32 reference matching the torch semantics."""
    B, _, H, W = x.shape
    if not disable_coords:
        loc = _compute_locations(H, W)
        loc = jnp.broadcast_to(loc[None], (B, 2, H, W))
        x = jnp.concatenate([loc.astype(x.dtype), x], axis=1)
    C_in = x.shape[1]
    feats = jnp.concatenate(
        [jnp.repeat(x[b:b + 1], int(num_ins[b]), axis=0) for b in range(B)],
        axis=0)                                                # (N_pos, C_in, H, W)
    weights, biases = parse_dynamic_params(
        cond_head_params, mid_channels, weight_nums, bias_nums,
        out_channels=out_channels, mask=is_mask)
    n_pos = feats.shape[0]
    n_layers = len(weights)
    h = feats.reshape(n_pos, C_in, H * W)
    for l, (w, b) in enumerate(zip(weights, biases)):
        h = jnp.einsum("noi,nim->nom", w, h) + b
        if l < n_layers - 1:
            h = jnp.maximum(h, 0.0)
    return h.reshape(n_pos * out_channels, H, W)


if __name__ == "__main__":
    # Small config consistent with CondLane's DynamicHead (scaled down):
    # in_channels=16 (+2 coord channels), mid_channels=32, num_layers=3,
    # out_channels=1, feature map 16x16, batch=2, num_ins=[2, 3].
    in_channels, mid_channels, num_layers, out_channels = 16, 32, 3, 1
    B, H, W = 2, 16, 16
    num_ins = [2, 3]
    n_pos = int(sum(num_ins))

    c_in0 = in_channels + 2                                    # coords enabled
    dims_in = [c_in0] + [mid_channels] * (num_layers - 1)
    dims_out = [mid_channels] * (num_layers - 1) + [out_channels]
    weight_nums = [i * o for i, o in zip(dims_in, dims_out)]   # [576, 1024, 32]
    bias_nums = list(dims_out)                                 # [32, 32, 1]
    num_gen_params = sum(weight_nums) + sum(bias_nums)         # 1697

    key = jax.random.PRNGKey(0)
    kx, kp = jax.random.split(key)
    x = jax.random.normal(kx, (B, in_channels, H, W), jnp.float32)
    cond_head_params = 0.1 * jax.random.normal(
        kp, (n_pos, num_gen_params), jnp.float32)

    y = dynamic_head_forward(
        x, cond_head_params, num_ins,
        mid_channels=mid_channels, weight_nums=weight_nums,
        bias_nums=bias_nums, out_channels=out_channels,
        disable_coords=False, is_mask=True)
    y = jax.block_until_ready(y)

    y_ref = dynamic_head_reference(
        x, cond_head_params, num_ins,
        mid_channels=mid_channels, weight_nums=weight_nums,
        bias_nums=bias_nums, out_channels=out_channels,
        disable_coords=False, is_mask=True)

    assert y.shape == (n_pos * out_channels, H, W), y.shape
    max_err = float(jnp.max(jnp.abs(y - y_ref)))
    # bf16 matmul inputs with f32 accumulation -> relaxed tolerance.
    assert jnp.allclose(y, y_ref, atol=5e-2, rtol=5e-2), f"max abs err {max_err}"

    print("KERNEL_OK")
</pallas_src>

<mosaic_0001>
module attributes {stable_mosaic.version = 11 : i64} {
  func.func @kernel(%arg0: i32, %arg1: i32, %arg2: memref<8xi32, #tpu.memory_space<smem>>, %arg3: memref<2x32x256xbf16, #tpu.memory_space<vmem>>, %arg4: memref<8x32x32xbf16, #tpu.memory_space<vmem>>, %arg5: memref<8x32x1xf32, #tpu.memory_space<vmem>>, %arg6: memref<8x32x32xbf16, #tpu.memory_space<vmem>>, %arg7: memref<8x32x1xf32, #tpu.memory_space<vmem>>, %arg8: memref<8x32x1xf32, #tpu.memory_space<vmem>>, %arg9: memref<8x1x1xf32, #tpu.memory_space<vmem>>, %arg10: memref<8x256xf32, #tpu.memory_space<vmem>>) attributes {dimension_semantics = [#tpu.dimension_semantics<parallel>, #tpu.dimension_semantics<parallel>], iteration_bounds = array<i64: 1, 1>, scalar_prefetch = 1 : i64, scratch_operands = 0 : i64, tpu.core_type = #tpu.core_type<tc>, window_params = [{transform_indices = @transform_0, window_bounds = array<i64: 2, 32, 256>}, {pipeline_mode = #tpu.pipeline_mode<synchronous>, transform_indices = @transform_1, window_bounds = array<i64: 8, 32, 32>}, {pipeline_mode = #tpu.pipeline_mode<synchronous>, transform_indices = @transform_2, window_bounds = array<i64: 8, 32, 1>}, {pipeline_mode = #tpu.pipeline_mode<synchronous>, transform_indices = @transform_3, window_bounds = array<i64: 8, 32, 32>}, {pipeline_mode = #tpu.pipeline_mode<synchronous>, transform_indices = @transform_4, window_bounds = array<i64: 8, 32, 1>}, {pipeline_mode = #tpu.pipeline_mode<synchronous>, transform_indices = @transform_5, window_bounds = array<i64: 8, 32, 1>}, {pipeline_mode = #tpu.pipeline_mode<synchronous>, transform_indices = @transform_6, window_bounds = array<i64: 8, 1, 1>}, {transform_indices = @transform_7, window_bounds = array<i64: 8, 256>}]} {
    %c8_i32 = arith.constant 8 : i32
    %0 = arith.muli %arg1, %c8_i32 : i32
    %c0_i32 = arith.constant 0 : i32
    %1 = arith.addi %0, %c0_i32 : i32
    %2 = arith.index_cast %1 : i32 to index
    %3 = memref.load %arg2[%2] : memref<8xi32, #tpu.memory_space<smem>>
    %4 = arith.index_cast %3 : i32 to index
    %c0 = arith.constant 0 : index
    %c0_0 = arith.constant 0 : index
    %5 = vector.load %arg3[%4, %c0, %c0_0] : memref<2x32x256xbf16, #tpu.memory_space<vmem>>, vector<1x32x256xbf16>
    %6 = vector.shape_cast %5 : vector<1x32x256xbf16> to vector<32x256xbf16>
    %7 = arith.index_cast %1 : i32 to index
    %c0_1 = arith.constant 0 : index
    %c0_2 = arith.constant 0 : index
    %8 = vector.load %arg4[%7, %c0_1, %c0_2] : memref<8x32x32xbf16, #tpu.memory_space<vmem>>, vector<1x32x32xbf16>
    %9 = vector.shape_cast %8 : vector<1x32x32xbf16> to vector<32x32xbf16>
    %10 = arith.index_cast %1 : i32 to index
    %c0_3 = arith.constant 0 : index
    %c0_4 = arith.constant 0 : index
    %11 = vector.load %arg5[%10, %c0_3, %c0_4] : memref<8x32x1xf32, #tpu.memory_space<vmem>>, vector<1x32x1xf32>
    %12 = vector.shape_cast %11 : vector<1x32x1xf32> to vector<32x1xf32>
    %cst = arith.constant dense<0.000000e+00> : vector<32x256xf32>
    %13 = tpu.matmul %9, %6, %cst {dimension_numbers = #tpu.dot_dimension_numbers<[1], [0], [0], [1], [0, 0, 1, 1], [], []>} : vector<32x32xbf16>, vector<32x256xbf16>, vector<32x256xf32> -> vector<32x256xf32>
    %14 = vector.broadcast %12 : vector<32x1xf32> to vector<32x256xf32>
    %15 = arith.addf %13, %14 : vector<32x256xf32>
    %cst_5 = arith.constant 0.000000e+00 : f32
    %16 = vector.broadcast %cst_5 : f32 to vector<32x256xf32>
    %17 = arith.maximumf %15, %16 : vector<32x256xf32>
    %18 = arith.index_cast %1 : i32 to index
    %c0_6 = arith.constant 0 : index
    %c0_7 = arith.constant 0 : index
    %19 = vector.load %arg6[%18, %c0_6, %c0_7] : memref<8x32x32xbf16, #tpu.memory_space<vmem>>, vector<1x32x32xbf16>
    %20 = vector.shape_cast %19 : vector<1x32x32xbf16> to vector<32x32xbf16>
    %21 = arith.index_cast %1 : i32 to index
    %c0_8 = arith.constant 0 : index
    %c0_9 = arith.constant 0 : index
    %22 = vector.load %arg7[%21, %c0_8, %c0_9] : memref<8x32x1xf32, #tpu.memory_space<vmem>>, vector<1x32x1xf32>
    %23 = vector.shape_cast %22 : vector<1x32x1xf32> to vector<32x1xf32>
    %24 = arith.truncf %17 : vector<32x256xf32> to vector<32x256xbf16>
    %cst_10 = arith.constant dense<0.000000e+00> : vector<32x256xf32>
    %25 = tpu.matmul %20, %24, %cst_10 {dimension_numbers = #tpu.dot_dimension_numbers<[1], [0], [0], [1], [0, 0, 1, 1], [], []>} : vector<32x32xbf16>, vector<32x256xbf16>, vector<32x256xf32> -> vector<32x256xf32>
    %26 = vector.broadcast %23 : vector<32x1xf32> to vector<32x256xf32>
    %27 = arith.addf %25, %26 : vector<32x256xf32>
    %cst_11 = arith.constant 0.000000e+00 : f32
    %28 = vector.broadcast %cst_11 : f32 to vector<32x256xf32>
    %29 = arith.maximumf %27, %28 : vector<32x256xf32>
    %30 = arith.index_cast %1 : i32 to index
    %c0_12 = arith.constant 0 : index
    %c0_13 = arith.constant 0 : index
    %31 = vector.load %arg8[%30, %c0_12, %c0_13] : memref<8x32x1xf32, #tpu.memory_space<vmem>>, vector<1x32x1xf32>
    %32 = vector.shape_cast %31 : vector<1x32x1xf32> to vector<32x1xf32>
    %33 = arith.index_cast %1 : i32 to index
    %c0_14 = arith.constant 0 : index
    %c0_15 = arith.constant 0 : index
    %34 = vector.load %arg9[%33, %c0_14, %c0_15] : memref<8x1x1xf32, #tpu.memory_space<vmem>>, vector<1x1x1xf32>
    %35 = vector.shape_cast %34 : vector<1x1x1xf32> to vector<1x1xf32>
    %36 = vector.broadcast %32 : vector<32x1xf32> to vector<32x256xf32>
    %37 = arith.mulf %36, %29 : vector<32x256xf32>
    %cst_16 = arith.constant dense<0.000000e+00> : vector<256xf32>
    %38 = vector.multi_reduction <add>, %37, %cst_16 [0] : vector<32x256xf32> to vector<256xf32>
    %39 = vector.shape_cast %38 : vector<256xf32> to vector<1x256xf32>
    %40 = vector.broadcast %35 : vector<1x1xf32> to vector<1x256xf32>
    %41 = arith.addf %39, %40 : vector<1x256xf32>
    %c0_17 = arith.constant 0 : index
    %c0_18 = arith.constant 0 : index
    %42 = vector.load %arg10[%c0_17, %c0_18] : memref<8x256xf32, #tpu.memory_space<vmem>>, vector<1x256xf32>
    tpu.vector_store %arg10[%c0_17, %c0_18], %41 {strides = array<i32>} : memref<8x256xf32, #tpu.memory_space<vmem>>, vector<1x256xf32>,
    %c8_i32_19 = arith.constant 8 : i32
    %43 = arith.muli %arg1, %c8_i32_19 : i32
    %c1_i32 = arith.constant 1 : i32
    %44 = arith.addi %43, %c1_i32 : i32
    %45 = arith.index_cast %44 : i32 to index
    %46 = memref.load %arg2[%45] : memref<8xi32, #tpu.memory_space<smem>>
    %47 = arith.index_cast %46 : i32 to index
    %c0_20 = arith.constant 0 : index
    %c0_21 = arith.constant 0 : index
    %48 = vector.load %arg3[%47, %c0_20, %c0_21] : memref<2x32x256xbf16, #tpu.memory_space<vmem>>, vector<1x32x256xbf16>
    %49 = vector.shape_cast %48 : vector<1x32x256xbf16> to vector<32x256xbf16>
    %50 = arith.index_cast %44 : i32 to index
    %c0_22 = arith.constant 0 : index
    %c0_23 = arith.constant 0 : index
    %51 = vector.load %arg4[%50, %c0_22, %c0_23] : memref<8x32x32xbf16, #tpu.memory_space<vmem>>, vector<1x32x32xbf16>
    %52 = vector.shape_cast %51 : vector<1x32x32xbf16> to vector<32x32xbf16>
    %53 = arith.index_cast %44 : i32 to index
    %c0_24 = arith.constant 0 : index
    %c0_25 = arith.constant 0 : index
    %54 = vector.load %arg5[%53, %c0_24, %c0_25] : memref<8x32x1xf32, #tpu.memory_space<vmem>>, vector<1x32x1xf32>
    %55 = vector.shape_cast %54 : vector<1x32x1xf32> to vector<32x1xf32>
    %cst_26 = arith.constant dense<0.000000e+00> : vector<32x256xf32>
    %56 = tpu.matmul %52, %49, %cst_26 {dimension_numbers = #tpu.dot_dimension_numbers<[1], [0], [0], [1], [0, 0, 1, 1], [], []>} : vector<32x32xbf16>, vector<32x256xbf16>, vector<32x256xf32> -> vector<32x256xf32>
    %57 = vector.broadcast %55 : vector<32x1xf32> to vector<32x256xf32>
    %58 = arith.addf %56, %57 : vector<32x256xf32>
    %cst_27 = arith.constant 0.000000e+00 : f32
    %59 = vector.broadcast %cst_27 : f32 to vector<32x256xf32>
    %60 = arith.maximumf %58, %59 : vector<32x256xf32>
    %61 = arith.index_cast %44 : i32 to index
    %c0_28 = arith.constant 0 : index
    %c0_29 = arith.constant 0 : index
    %62 = vector.load %arg6[%61, %c0_28, %c0_29] : memref<8x32x32xbf16, #tpu.memory_space<vmem>>, vector<1x32x32xbf16>
    %63 = vector.shape_cast %62 : vector<1x32x32xbf16> to vector<32x32xbf16>
    %64 = arith.index_cast %44 : i32 to index
    %c0_30 = arith.constant 0 : index
    %c0_31 = arith.constant 0 : index
    %65 = vector.load %arg7[%64, %c0_30, %c0_31] : memref<8x32x1xf32, #tpu.memory_space<vmem>>, vector<1x32x1xf32>
    %66 = vector.shape_cast %65 : vector<1x32x1xf32> to vector<32x1xf32>
    %67 = arith.truncf %60 : vector<32x256xf32> to vector<32x256xbf16>
    %cst_32 = arith.constant dense<0.000000e+00> : vector<32x256xf32>
    %68 = tpu.matmul %63, %67, %cst_32 {dimension_numbers = #tpu.dot_dimension_numbers<[1], [0], [0], [1], [0, 0, 1, 1], [], []>} : vector<32x32xbf16>, vector<32x256xbf16>, vector<32x256xf32> -> vector<32x256xf32>
    %69 = vector.broadcast %66 : vector<32x1xf32> to vector<32x256xf32>
    %70 = arith.addf %68, %69 : vector<32x256xf32>
    %cst_33 = arith.constant 0.000000e+00 : f32
    %71 = vector.broadcast %cst_33 : f32 to vector<32x256xf32>
    %72 = arith.maximumf %70, %71 : vector<32x256xf32>
    %73 = arith.index_cast %44 : i32 to index
    %c0_34 = arith.constant 0 : index
    %c0_35 = arith.constant 0 : index
    %74 = vector.load %arg8[%73, %c0_34, %c0_35] : memref<8x32x1xf32, #tpu.memory_space<vmem>>, vector<1x32x1xf32>
    %75 = vector.shape_cast %74 : vector<1x32x1xf32> to vector<32x1xf32>
    %76 = arith.index_cast %44 : i32 to index
    %c0_36 = arith.constant 0 : index
    %c0_37 = arith.constant 0 : index
    %77 = vector.load %arg9[%76, %c0_36, %c0_37] : memref<8x1x1xf32, #tpu.memory_space<vmem>>, vector<1x1x1xf32>
    %78 = vector.shape_cast %77 : vector<1x1x1xf32> to vector<1x1xf32>
    %79 = vector.broadcast %75 : vector<32x1xf32> to vector<32x256xf32>
    %80 = arith.mulf %79, %72 : vector<32x256xf32>
    %cst_38 = arith.constant dense<0.000000e+00> : vector<256xf32>
    %81 = vector.multi_reduction <add>, %80, %cst_38 [0] : vector<32x256xf32> to vector<256xf32>
    %82 = vector.shape_cast %81 : vector<256xf32> to vector<1x256xf32>
    %83 = vector.broadcast %78 : vector<1x1xf32> to vector<1x256xf32>
    %84 = arith.addf %82, %83 : vector<1x256xf32>
    %c1 = arith.constant 1 : index
    %c0_39 = arith.constant 0 : index
    %85 = vector.load %arg10[%c1, %c0_39] : memref<8x256xf32, #tpu.memory_space<vmem>>, vector<1x256xf32>
    tpu.vector_store %arg10[%c1, %c0_39], %84 {strides = array<i32>} : memref<8x256xf32, #tpu.memory_space<vmem>>, vector<1x256xf32>,
    %c8_i32_40 = arith.constant 8 : i32
    %86 = arith.muli %arg1, %c8_i32_40 : i32
    %c2_i32 = arith.constant 2 : i32
    %87 = arith.addi %86, %c2_i32 : i32
    %88 = arith.index_cast %87 : i32 to index
    %89 = memref.load %arg2[%88] : memref<8xi32, #tpu.memory_space<smem>>
    %90 = arith.index_cast %89 : i32 to index
    %c0_41 = arith.constant 0 : index
    %c0_42 = arith.constant 0 : index
    %91 = vector.load %arg3[%90, %c0_41, %c0_42] : memref<2x32x256xbf16, #tpu.memory_space<vmem>>, vector<1x32x256xbf16>
    %92 = vector.shape_cast %91 : vector<1x32x256xbf16> to vector<32x256xbf16>
    %93 = arith.index_cast %87 : i32 to index
    %c0_43 = arith.constant 0 : index
    %c0_44 = arith.constant 0 : index
    %94 = vector.load %arg4[%93, %c0_43, %c0_44] : memref<8x32x32xbf16, #tpu.memory_space<vmem>>, vector<1x32x32xbf16>
    %95 = vector.shape_cast %94 : vector<1x32x32xbf16> to vector<32x32xbf16>
    %96 = arith.index_cast %87 : i32 to index
    %c0_45 = arith.constant 0 : index
    %c0_46 = arith.constant 0 : index
    %97 = vector.load %arg5[%96, %c0_45, %c0_46] : memref<8x32x1xf32, #tpu.memory_space<vmem>>, vector<1x32x1xf32>
    %98 = vector.shape_cast %97 : vector<1x32x1xf32> to vector<32x1xf32>
    %cst_47 = arith.constant dense<0.000000e+00> : vector<32x256xf32>
    %99 = tpu.matmul %95, %92, %cst_47 {dimension_numbers = #tpu.dot_dimension_numbers<[1], [0], [0], [1], [0, 0, 1, 1], [], []>} : vector<32x32xbf16>, vector<32x256xbf16>, vector<32x256xf32> -> vector<32x256xf32>
    %100 = vector.broadcast %98 : vector<32x1xf32> to vector<32x256xf32>
    %101 = arith.addf %99, %100 : vector<32x256xf32>
    %cst_48 = arith.constant 0.000000e+00 : f32
    %102 = vector.broadcast %cst_48 : f32 to vector<32x256xf32>
    %103 = arith.maximumf %101, %102 : vector<32x256xf32>
    %104 = arith.index_cast %87 : i32 to index
    %c0_49 = arith.constant 0 : index
    %c0_50 = arith.constant 0 : index
    %105 = vector.load %arg6[%104, %c0_49, %c0_50] : memref<8x32x32xbf16, #tpu.memory_space<vmem>>, vector<1x32x32xbf16>
    %106 = vector.shape_cast %105 : vector<1x32x32xbf16> to vector<32x32xbf16>
    %107 = arith.index_cast %87 : i32 to index
    %c0_51 = arith.constant 0 : index
    %c0_52 = arith.constant 0 : index
    %108 = vector.load %arg7[%107, %c0_51, %c0_52] : memref<8x32x1xf32, #tpu.memory_space<vmem>>, vector<1x32x1xf32>
    %109 = vector.shape_cast %108 : vector<1x32x1xf32> to vector<32x1xf32>
    %110 = arith.truncf %103 : vector<32x256xf32> to vector<32x256xbf16>
    %cst_53 = arith.constant dense<0.000000e+00> : vector<32x256xf32>
    %111 = tpu.matmul %106, %110, %cst_53 {dimension_numbers = #tpu.dot_dimension_numbers<[1], [0], [0], [1], [0, 0, 1, 1], [], []>} : vector<32x32xbf16>, vector<32x256xbf16>, vector<32x256xf32> -> vector<32x256xf32>
    %112 = vector.broadcast %109 : vector<32x1xf32> to vector<32x256xf32>
    %113 = arith.addf %111, %112 : vector<32x256xf32>
    %cst_54 = arith.constant 0.000000e+00 : f32
    %114 = vector.broadcast %cst_54 : f32 to vector<32x256xf32>
    %115 = arith.maximumf %113, %114 : vector<32x256xf32>
    %116 = arith.index_cast %87 : i32 to index
    %c0_55 = arith.constant 0 : index
    %c0_56 = arith.constant 0 : index
    %117 = vector.load %arg8[%116, %c0_55, %c0_56] : memref<8x32x1xf32, #tpu.memory_space<vmem>>, vector<1x32x1xf32>
    %118 = vector.shape_cast %117 : vector<1x32x1xf32> to vector<32x1xf32>
    %119 = arith.index_cast %87 : i32 to index
    %c0_57 = arith.constant 0 : index
    %c0_58 = arith.constant 0 : index
    %120 = vector.load %arg9[%119, %c0_57, %c0_58] : memref<8x1x1xf32, #tpu.memory_space<vmem>>, vector<1x1x1xf32>
    %121 = vector.shape_cast %120 : vector<1x1x1xf32> to vector<1x1xf32>
    %122 = vector.broadcast %118 : vector<32x1xf32> to vector<32x256xf32>
    %123 = arith.mulf %122, %115 : vector<32x256xf32>
    %cst_59 = arith.constant dense<0.000000e+00> : vector<256xf32>
    %124 = vector.multi_reduction <add>, %123, %cst_59 [0] : vector<32x256xf32> to vector<256xf32>
    %125 = vector.shape_cast %124 : vector<256xf32> to vector<1x256xf32>
    %126 = vector.broadcast %121 : vector<1x1xf32> to vector<1x256xf32>
    %127 = arith.addf %125, %126 : vector<1x256xf32>
    %c2 = arith.constant 2 : index
    %c0_60 = arith.constant 0 : index
    %128 = vector.load %arg10[%c2, %c0_60] : memref<8x256xf32, #tpu.memory_space<vmem>>, vector<1x256xf32>
    tpu.vector_store %arg10[%c2, %c0_60], %127 {strides = array<i32>} : memref<8x256xf32, #tpu.memory_space<vmem>>, vector<1x256xf32>,
    %c8_i32_61 = arith.constant 8 : i32
    %129 = arith.muli %arg1, %c8_i32_61 : i32
    %c3_i32 = arith.constant 3 : i32
    %130 = arith.addi %129, %c3_i32 : i32
    %131 = arith.index_cast %130 : i32 to index
    %132 = memref.load %arg2[%131] : memref<8xi32, #tpu.memory_space<smem>>
    %133 = arith.index_cast %132 : i32 to index
    %c0_62 = arith.constant 0 : index
    %c0_63 = arith.constant 0 : index
    %134 = vector.load %arg3[%133, %c0_62, %c0_63] : memref<2x32x256xbf16, #tpu.memory_space<vmem>>, vector<1x32x256xbf16>
    %135 = vector.shape_cast %134 : vector<1x32x256xbf16> to vector<32x256xbf16>
    %136 = arith.index_cast %130 : i32 to index
    %c0_64 = arith.constant 0 : index
    %c0_65 = arith.constant 0 : index
    %137 = vector.load %arg4[%136, %c0_64, %c0_65] : memref<8x32x32xbf16, #tpu.memory_space<vmem>>, vector<1x32x32xbf16>
    %138 = vector.shape_cast %137 : vector<1x32x32xbf16> to vector<32x32xbf16>
    %139 = arith.index_cast %130 : i32 to index
    %c0_66 = arith.constant 0 : index
    %c0_67 = arith.constant 0 : index
    %140 = vector.load %arg5[%139, %c0_66, %c0_67] : memref<8x32x1xf32, #tpu.memory_space<vmem>>, vector<1x32x1xf32>
    %141 = vector.shape_cast %140 : vector<1x32x1xf32> to vector<32x1xf32>
    %cst_68 = arith.constant dense<0.000000e+00> : vector<32x256xf32>
    %142 = tpu.matmul %138, %135, %cst_68 {dimension_numbers = #tpu.dot_dimension_numbers<[1], [0], [0], [1], [0, 0, 1, 1], [], []>} : vector<32x32xbf16>, vector<32x256xbf16>, vector<32x256xf32> -> vector<32x256xf32>
    %143 = vector.broadcast %141 : vector<32x1xf32> to vector<32x256xf32>
    %144 = arith.addf %142, %143 : vector<32x256xf32>
    %cst_69 = arith.constant 0.000000e+00 : f32
    %145 = vector.broadcast %cst_69 : f32 to vector<32x256xf32>
    %146 = arith.maximumf %144, %145 : vector<32x256xf32>
    %147 = arith.index_cast %130 : i32 to index
    %c0_70 = arith.constant 0 : index
    %c0_71 = arith.constant 0 : index
    %148 = vector.load %arg6[%147, %c0_70, %c0_71] : memref<8x32x32xbf16, #tpu.memory_space<vmem>>, vector<1x32x32xbf16>
    %149 = vector.shape_cast %148 : vector<1x32x32xbf16> to vector<32x32xbf16>
    %150 = arith.index_cast %130 : i32 to index
    %c0_72 = arith.constant 0 : index
    %c0_73 = arith.constant 0 : index
    %151 = vector.load %arg7[%150, %c0_72, %c0_73] : memref<8x32x1xf32, #tpu.memory_space<vmem>>, vector<1x32x1xf32>
    %152 = vector.shape_cast %151 : vector<1x32x1xf32> to vector<32x1xf32>
    %153 = arith.truncf %146 : vector<32x256xf32> to vector<32x256xbf16>
    %cst_74 = arith.constant dense<0.000000e+00> : vector<32x256xf32>
    %154 = tpu.matmul %149, %153, %cst_74 {dimension_numbers = #tpu.dot_dimension_numbers<[1], [0], [0], [1], [0, 0, 1, 1], [], []>} : vector<32x32xbf16>, vector<32x256xbf16>, vector<32x256xf32> -> vector<32x256xf32>
    %155 = vector.broadcast %152 : vector<32x1xf32> to vector<32x256xf32>
    %156 = arith.addf %154, %155 : vector<32x256xf32>
    %cst_75 = arith.constant 0.000000e+00 : f32
    %157 = vector.broadcast %cst_75 : f32 to vector<32x256xf32>
    %158 = arith.maximumf %156, %157 : vector<32x256xf32>
    %159 = arith.index_cast %130 : i32 to index
    %c0_76 = arith.constant 0 : index
    %c0_77 = arith.constant 0 : index
    %160 = vector.load %arg8[%159, %c0_76, %c0_77] : memref<8x32x1xf32, #tpu.memory_space<vmem>>, vector<1x32x1xf32>
    %161 = vector.shape_cast %160 : vector<1x32x1xf32> to vector<32x1xf32>
    %162 = arith.index_cast %130 : i32 to index
    %c0_78 = arith.constant 0 : index
    %c0_79 = arith.constant 0 : index
    %163 = vector.load %arg9[%162, %c0_78, %c0_79] : memref<8x1x1xf32, #tpu.memory_space<vmem>>, vector<1x1x1xf32>
    %164 = vector.shape_cast %163 : vector<1x1x1xf32> to vector<1x1xf32>
    %165 = vector.broadcast %161 : vector<32x1xf32> to vector<32x256xf32>
    %166 = arith.mulf %165, %158 : vector<32x256xf32>
    %cst_80 = arith.constant dense<0.000000e+00> : vector<256xf32>
    %167 = vector.multi_reduction <add>, %166, %cst_80 [0] : vector<32x256xf32> to vector<256xf32>
    %168 = vector.shape_cast %167 : vector<256xf32> to vector<1x256xf32>
    %169 = vector.broadcast %164 : vector<1x1xf32> to vector<1x256xf32>
    %170 = arith.addf %168, %169 : vector<1x256xf32>
    %c3 = arith.constant 3 : index
    %c0_81 = arith.constant 0 : index
    %171 = vector.load %arg10[%c3, %c0_81] : memref<8x256xf32, #tpu.memory_space<vmem>>, vector<1x256xf32>
    tpu.vector_store %arg10[%c3, %c0_81], %170 {strides = array<i32>} : memref<8x256xf32, #tpu.memory_space<vmem>>, vector<1x256xf32>,
    %c8_i32_82 = arith.constant 8 : i32
    %172 = arith.muli %arg1, %c8_i32_82 : i32
    %c4_i32 = arith.constant 4 : i32
    %173 = arith.addi %172, %c4_i32 : i32
    %174 = arith.index_cast %173 : i32 to index
    %175 = memref.load %arg2[%174] : memref<8xi32, #tpu.memory_space<smem>>
    %176 = arith.index_cast %175 : i32 to index
    %c0_83 = arith.constant 0 : index
    %c0_84 = arith.constant 0 : index
    %177 = vector.load %arg3[%176, %c0_83, %c0_84] : memref<2x32x256xbf16, #tpu.memory_space<vmem>>, vector<1x32x256xbf16>
    %178 = vector.shape_cast %177 : vector<1x32x256xbf16> to vector<32x256xbf16>
    %179 = arith.index_cast %173 : i32 to index
    %c0_85 = arith.constant 0 : index
    %c0_86 = arith.constant 0 : index
    %180 = vector.load %arg4[%179, %c0_85, %c0_86] : memref<8x32x32xbf16, #tpu.memory_space<vmem>>, vector<1x32x32xbf16>
    %181 = vector.shape_cast %180 : vector<1x32x32xbf16> to vector<32x32xbf16>
    %182 = arith.index_cast %173 : i32 to index
    %c0_87 = arith.constant 0 : index
    %c0_88 = arith.constant 0 : index
    %183 = vector.load %arg5[%182, %c0_87, %c0_88] : memref<8x32x1xf32, #tpu.memory_space<vmem>>, vector<1x32x1xf32>
    %184 = vector.shape_cast %183 : vector<1x32x1xf32> to vector<32x1xf32>
    %cst_89 = arith.constant dense<0.000000e+00> : vector<32x256xf32>
    %185 = tpu.matmul %181, %178, %cst_89 {dimension_numbers = #tpu.dot_dimension_numbers<[1], [0], [0], [1], [0, 0, 1, 1], [], []>} : vector<32x32xbf16>, vector<32x256xbf16>, vector<32x256xf32> -> vector<32x256xf32>
    %186 = vector.broadcast %184 : vector<32x1xf32> to vector<32x256xf32>
    %187 = arith.addf %185, %186 : vector<32x256xf32>
    %cst_90 = arith.constant 0.000000e+00 : f32
    %188 = vector.broadcast %cst_90 : f32 to vector<32x256xf32>
    %189 = arith.maximumf %187, %188 : vector<32x256xf32>
    %190 = arith.index_cast %173 : i32 to index
    %c0_91 = arith.constant 0 : index
    %c0_92 = arith.constant 0 : index
    %191 = vector.load %arg6[%190, %c0_91, %c0_92] : memref<8x32x32xbf16, #tpu.memory_space<vmem>>, vector<1x32x32xbf16>
    %192 = vector.shape_cast %191 : vector<1x32x32xbf16> to vector<32x32xbf16>
    %193 = arith.index_cast %173 : i32 to index
    %c0_93 = arith.constant 0 : index
    %c0_94 = arith.constant 0 : index
    %194 = vector.load %arg7[%193, %c0_93, %c0_94] : memref<8x32x1xf32, #tpu.memory_space<vmem>>, vector<1x32x1xf32>
    %195 = vector.shape_cast %194 : vector<1x32x1xf32> to vector<32x1xf32>
    %196 = arith.truncf %189 : vector<32x256xf32> to vector<32x256xbf16>
    %cst_95 = arith.constant dense<0.000000e+00> : vector<32x256xf32>
    %197 = tpu.matmul %192, %196, %cst_95 {dimension_numbers = #tpu.dot_dimension_numbers<[1], [0], [0], [1], [0, 0, 1, 1], [], []>} : vector<32x32xbf16>, vector<32x256xbf16>, vector<32x256xf32> -> vector<32x256xf32>
    %198 = vector.broadcast %195 : vector<32x1xf32> to vector<32x256xf32>
    %199 = arith.addf %197, %198 : vector<32x256xf32>
    %cst_96 = arith.constant 0.000000e+00 : f32
    %200 = vector.broadcast %cst_96 : f32 to vector<32x256xf32>
    %201 = arith.maximumf %199, %200 : vector<32x256xf32>
    %202 = arith.index_cast %173 : i32 to index
    %c0_97 = arith.constant 0 : index
    %c0_98 = arith.constant 0 : index
    %203 = vector.load %arg8[%202, %c0_97, %c0_98] : memref<8x32x1xf32, #tpu.memory_space<vmem>>, vector<1x32x1xf32>
    %204 = vector.shape_cast %203 : vector<1x32x1xf32> to vector<32x1xf32>
    %205 = arith.index_cast %173 : i32 to index
    %c0_99 = arith.constant 0 : index
    %c0_100 = arith.constant 0 : index
    %206 = vector.load %arg9[%205, %c0_99, %c0_100] : memref<8x1x1xf32, #tpu.memory_space<vmem>>, vector<1x1x1xf32>
    %207 = vector.shape_cast %206 : vector<1x1x1xf32> to vector<1x1xf32>
    %208 = vector.broadcast %204 : vector<32x1xf32> to vector<32x256xf32>
    %209 = arith.mulf %208, %201 : vector<32x256xf32>
    %cst_101 = arith.constant dense<0.000000e+00> : vector<256xf32>
    %210 = vector.multi_reduction <add>, %209, %cst_101 [0] : vector<32x256xf32> to vector<256xf32>
    %211 = vector.shape_cast %210 : vector<256xf32> to vector<1x256xf32>
    %212 = vector.broadcast %207 : vector<1x1xf32> to vector<1x256xf32>
    %213 = arith.addf %211, %212 : vector<1x256xf32>
    %c4 = arith.constant 4 : index
    %c0_102 = arith.constant 0 : index
    %214 = vector.load %arg10[%c4, %c0_102] : memref<8x256xf32, #tpu.memory_space<vmem>>, vector<1x256xf32>
    tpu.vector_store %arg10[%c4, %c0_102], %213 {strides = array<i32>} : memref<8x256xf32, #tpu.memory_space<vmem>>, vector<1x256xf32>,
    %c8_i32_103 = arith.constant 8 : i32
    %215 = arith.muli %arg1, %c8_i32_103 : i32
    %c5_i32 = arith.constant 5 : i32
    %216 = arith.addi %215, %c5_i32 : i32
    %217 = arith.index_cast %216 : i32 to index
    %218 = memref.load %arg2[%217] : memref<8xi32, #tpu.memory_space<smem>>
    %219 = arith.index_cast %218 : i32 to index
    %c0_104 = arith.constant 0 : index
    %c0_105 = arith.constant 0 : index
    %220 = vector.load %arg3[%219, %c0_104, %c0_105] : memref<2x32x256xbf16, #tpu.memory_space<vmem>>, vector<1x32x256xbf16>
    %221 = vector.shape_cast %220 : vector<1x32x256xbf16> to vector<32x256xbf16>
    %222 = arith.index_cast %216 : i32 to index
    %c0_106 = arith.constant 0 : index
    %c0_107 = arith.constant 0 : index
    %223 = vector.load %arg4[%222, %c0_106, %c0_107] : memref<8x32x32xbf16, #tpu.memory_space<vmem>>, vector<1x32x32xbf16>
    %224 = vector.shape_cast %223 : vector<1x32x32xbf16> to vector<32x32xbf16>
    %225 = arith.index_cast %216 : i32 to index
    %c0_108 = arith.constant 0 : index
    %c0_109 = arith.constant 0 : index
    %226 = vector.load %arg5[%225, %c0_108, %c0_109] : memref<8x32x1xf32, #tpu.memory_space<vmem>>, vector<1x32x1xf32>
    %227 = vector.shape_cast %226 : vector<1x32x1xf32> to vector<32x1xf32>
    %cst_110 = arith.constant dense<0.000000e+00> : vector<32x256xf32>
    %228 = tpu.matmul %224, %221, %cst_110 {dimension_numbers = #tpu.dot_dimension_numbers<[1], [0], [0], [1], [0, 0, 1, 1], [], []>} : vector<32x32xbf16>, vector<32x256xbf16>, vector<32x256xf32> -> vector<32x256xf32>
    %229 = vector.broadcast %227 : vector<32x1xf32> to vector<32x256xf32>
    %230 = arith.addf %228, %229 : vector<32x256xf32>
    %cst_111 = arith.constant 0.000000e+00 : f32
    %231 = vector.broadcast %cst_111 : f32 to vector<32x256xf32>
    %232 = arith.maximumf %230, %231 : vector<32x256xf32>
    %233 = arith.index_cast %216 : i32 to index
    %c0_112 = arith.constant 0 : index
    %c0_113 = arith.constant 0 : index
    %234 = vector.load %arg6[%233, %c0_112, %c0_113] : memref<8x32x32xbf16, #tpu.memory_space<vmem>>, vector<1x32x32xbf16>
    %235 = vector.shape_cast %234 : vector<1x32x32xbf16> to vector<32x32xbf16>
    %236 = arith.index_cast %216 : i32 to index
    %c0_114 = arith.constant 0 : index
    %c0_115 = arith.constant 0 : index
    %237 = vector.load %arg7[%236, %c0_114, %c0_115] : memref<8x32x1xf32, #tpu.memory_space<vmem>>, vector<1x32x1xf32>
    %238 = vector.shape_cast %237 : vector<1x32x1xf32> to vector<32x1xf32>
    %239 = arith.truncf %232 : vector<32x256xf32> to vector<32x256xbf16>
    %cst_116 = arith.constant dense<0.000000e+00> : vector<32x256xf32>
    %240 = tpu.matmul %235, %239, %cst_116 {dimension_numbers = #tpu.dot_dimension_numbers<[1], [0], [0], [1], [0, 0, 1, 1], [], []>} : vector<32x32xbf16>, vector<32x256xbf16>, vector<32x256xf32> -> vector<32x256xf32>
    %241 = vector.broadcast %238 : vector<32x1xf32> to vector<32x256xf32>
    %242 = arith.addf %240, %241 : vector<32x256xf32>
    %cst_117 = arith.constant 0.000000e+00 : f32
    %243 = vector.broadcast %cst_117 : f32 to vector<32x256xf32>
    %244 = arith.maximumf %242, %243 : vector<32x256xf32>
    %245 = arith.index_cast %216 : i32 to index
    %c0_118 = arith.constant 0 : index
    %c0_119 = arith.constant 0 : index
    %246 = vector.load %arg8[%245, %c0_118, %c0_119] : memref<8x32x1xf32, #tpu.memory_space<vmem>>, vector<1x32x1xf32>
    %247 = vector.shape_cast %246 : vector<1x32x1xf32> to vector<32x1xf32>
    %248 = arith.index_cast %216 : i32 to index
    %c0_120 = arith.constant 0 : index
    %c0_121 = arith.constant 0 : index
    %249 = vector.load %arg9[%248, %c0_120, %c0_121] : memref<8x1x1xf32, #tpu.memory_space<vmem>>, vector<1x1x1xf32>
    %250 = vector.shape_cast %249 : vector<1x1x1xf32> to vector<1x1xf32>
    %251 = vector.broadcast %247 : vector<32x1xf32> to vector<32x256xf32>
    %252 = arith.mulf %251, %244 : vector<32x256xf32>
    %cst_122 = arith.constant dense<0.000000e+00> : vector<256xf32>
    %253 = vector.multi_reduction <add>, %252, %cst_122 [0] : vector<32x256xf32> to vector<256xf32>
    %254 = vector.shape_cast %253 : vector<256xf32> to vector<1x256xf32>
    %255 = vector.broadcast %250 : vector<1x1xf32> to vector<1x256xf32>
    %256 = arith.addf %254, %255 : vector<1x256xf32>
    %c5 = arith.constant 5 : index
    %c0_123 = arith.constant 0 : index
    %257 = vector.load %arg10[%c5, %c0_123] : memref<8x256xf32, #tpu.memory_space<vmem>>, vector<1x256xf32>
    tpu.vector_store %arg10[%c5, %c0_123], %256 {strides = array<i32>} : memref<8x256xf32, #tpu.memory_space<vmem>>, vector<1x256xf32>,
    %c8_i32_124 = arith.constant 8 : i32
    %258 = arith.muli %arg1, %c8_i32_124 : i32
    %c6_i32 = arith.constant 6 : i32
    %259 = arith.addi %258, %c6_i32 : i32
    %260 = arith.index_cast %259 : i32 to index
    %261 = memref.load %arg2[%260] : memref<8xi32, #tpu.memory_space<smem>>
    %262 = arith.index_cast %261 : i32 to index
    %c0_125 = arith.constant 0 : index
    %c0_126 = arith.constant 0 : index
    %263 = vector.load %arg3[%262, %c0_125, %c0_126] : memref<2x32x256xbf16, #tpu.memory_space<vmem>>, vector<1x32x256xbf16>
    %264 = vector.shape_cast %263 : vector<1x32x256xbf16> to vector<32x256xbf16>
    %265 = arith.index_cast %259 : i32 to index
    %c0_127 = arith.constant 0 : index
    %c0_128 = arith.constant 0 : index
    %266 = vector.load %arg4[%265, %c0_127, %c0_128] : memref<8x32x32xbf16, #tpu.memory_space<vmem>>, vector<1x32x32xbf16>
    %267 = vector.shape_cast %266 : vector<1x32x32xbf16> to vector<32x32xbf16>
    %268 = arith.index_cast %259 : i32 to index
    %c0_129 = arith.constant 0 : index
    %c0_130 = arith.constant 0 : index
    %269 = vector.load %arg5[%268, %c0_129, %c0_130] : memref<8x32x1xf32, #tpu.memory_space<vmem>>, vector<1x32x1xf32>
    %270 = vector.shape_cast %269 : vector<1x32x1xf32> to vector<32x1xf32>
    %cst_131 = arith.constant dense<0.000000e+00> : vector<32x256xf32>
    %271 = tpu.matmul %267, %264, %cst_131 {dimension_numbers = #tpu.dot_dimension_numbers<[1], [0], [0], [1], [0, 0, 1, 1], [], []>} : vector<32x32xbf16>, vector<32x256xbf16>, vector<32x256xf32> -> vector<32x256xf32>
    %272 = vector.broadcast %270 : vector<32x1xf32> to vector<32x256xf32>
    %273 = arith.addf %271, %272 : vector<32x256xf32>
    %cst_132 = arith.constant 0.000000e+00 : f32
    %274 = vector.broadcast %cst_132 : f32 to vector<32x256xf32>
    %275 = arith.maximumf %273, %274 : vector<32x256xf32>
    %276 = arith.index_cast %259 : i32 to index
    %c0_133 = arith.constant 0 : index
    %c0_134 = arith.constant 0 : index
    %277 = vector.load %arg6[%276, %c0_133, %c0_134] : memref<8x32x32xbf16, #tpu.memory_space<vmem>>, vector<1x32x32xbf16>
    %278 = vector.shape_cast %277 : vector<1x32x32xbf16> to vector<32x32xbf16>
    %279 = arith.index_cast %259 : i32 to index
    %c0_135 = arith.constant 0 : index
    %c0_136 = arith.constant 0 : index
    %280 = vector.load %arg7[%279, %c0_135, %c0_136] : memref<8x32x1xf32, #tpu.memory_space<vmem>>, vector<1x32x1xf32>
    %281 = vector.shape_cast %280 : vector<1x32x1xf32> to vector<32x1xf32>
    %282 = arith.truncf %275 : vector<32x256xf32> to vector<32x256xbf16>
    %cst_137 = arith.constant dense<0.000000e+00> : vector<32x256xf32>
    %283 = tpu.matmul %278, %282, %cst_137 {dimension_numbers = #tpu.dot_dimension_numbers<[1], [0], [0], [1], [0, 0, 1, 1], [], []>} : vector<32x32xbf16>, vector<32x256xbf16>, vector<32x256xf32> -> vector<32x256xf32>
    %284 = vector.broadcast %281 : vector<32x1xf32> to vector<32x256xf32>
    %285 = arith.addf %283, %284 : vector<32x256xf32>
    %cst_138 = arith.constant 0.000000e+00 : f32
    %286 = vector.broadcast %cst_138 : f32 to vector<32x256xf32>
    %287 = arith.maximumf %285, %286 : vector<32x256xf32>
    %288 = arith.index_cast %259 : i32 to index
    %c0_139 = arith.constant 0 : index
    %c0_140 = arith.constant 0 : index
    %289 = vector.load %arg8[%288, %c0_139, %c0_140] : memref<8x32x1xf32, #tpu.memory_space<vmem>>, vector<1x32x1xf32>
    %290 = vector.shape_cast %289 : vector<1x32x1xf32> to vector<32x1xf32>
    %291 = arith.index_cast %259 : i32 to index
    %c0_141 = arith.constant 0 : index
    %c0_142 = arith.constant 0 : index
    %292 = vector.load %arg9[%291, %c0_141, %c0_142] : memref<8x1x1xf32, #tpu.memory_space<vmem>>, vector<1x1x1xf32>
    %293 = vector.shape_cast %292 : vector<1x1x1xf32> to vector<1x1xf32>
    %294 = vector.broadcast %290 : vector<32x1xf32> to vector<32x256xf32>
    %295 = arith.mulf %294, %287 : vector<32x256xf32>
    %cst_143 = arith.constant dense<0.000000e+00> : vector<256xf32>
    %296 = vector.multi_reduction <add>, %295, %cst_143 [0] : vector<32x256xf32> to vector<256xf32>
    %297 = vector.shape_cast %296 : vector<256xf32> to vector<1x256xf32>
    %298 = vector.broadcast %293 : vector<1x1xf32> to vector<1x256xf32>
    %299 = arith.addf %297, %298 : vector<1x256xf32>
    %c6 = arith.constant 6 : index
    %c0_144 = arith.constant 0 : index
    %300 = vector.load %arg10[%c6, %c0_144] : memref<8x256xf32, #tpu.memory_space<vmem>>, vector<1x256xf32>
    tpu.vector_store %arg10[%c6, %c0_144], %299 {strides = array<i32>} : memref<8x256xf32, #tpu.memory_space<vmem>>, vector<1x256xf32>,
    %c8_i32_145 = arith.constant 8 : i32
    %301 = arith.muli %arg1, %c8_i32_145 : i32
    %c7_i32 = arith.constant 7 : i32
    %302 = arith.addi %301, %c7_i32 : i32
    %303 = arith.index_cast %302 : i32 to index
    %304 = memref.load %arg2[%303] : memref<8xi32, #tpu.memory_space<smem>>
    %305 = arith.index_cast %304 : i32 to index
    %c0_146 = arith.constant 0 : index
    %c0_147 = arith.constant 0 : index
    %306 = vector.load %arg3[%305, %c0_146, %c0_147] : memref<2x32x256xbf16, #tpu.memory_space<vmem>>, vector<1x32x256xbf16>
    %307 = vector.shape_cast %306 : vector<1x32x256xbf16> to vector<32x256xbf16>
    %308 = arith.index_cast %302 : i32 to index
    %c0_148 = arith.constant 0 : index
    %c0_149 = arith.constant 0 : index
    %309 = vector.load %arg4[%308, %c0_148, %c0_149] : memref<8x32x32xbf16, #tpu.memory_space<vmem>>, vector<1x32x32xbf16>
    %310 = vector.shape_cast %309 : vector<1x32x32xbf16> to vector<32x32xbf16>
    %311 = arith.index_cast %302 : i32 to index
    %c0_150 = arith.constant 0 : index
    %c0_151 = arith.constant 0 : index
    %312 = vector.load %arg5[%311, %c0_150, %c0_151] : memref<8x32x1xf32, #tpu.memory_space<vmem>>, vector<1x32x1xf32>
    %313 = vector.shape_cast %312 : vector<1x32x1xf32> to vector<32x1xf32>
    %cst_152 = arith.constant dense<0.000000e+00> : vector<32x256xf32>
    %314 = tpu.matmul %310, %307, %cst_152 {dimension_numbers = #tpu.dot_dimension_numbers<[1], [0], [0], [1], [0, 0, 1, 1], [], []>} : vector<32x32xbf16>, vector<32x256xbf16>, vector<32x256xf32> -> vector<32x256xf32>
    %315 = vector.broadcast %313 : vector<32x1xf32> to vector<32x256xf32>
    %316 = arith.addf %314, %315 : vector<32x256xf32>
    %cst_153 = arith.constant 0.000000e+00 : f32
    %317 = vector.broadcast %cst_153 : f32 to vector<32x256xf32>
    %318 = arith.maximumf %316, %317 : vector<32x256xf32>
    %319 = arith.index_cast %302 : i32 to index
    %c0_154 = arith.constant 0 : index
    %c0_155 = arith.constant 0 : index
    %320 = vector.load %arg6[%319, %c0_154, %c0_155] : memref<8x32x32xbf16, #tpu.memory_space<vmem>>, vector<1x32x32xbf16>
    %321 = vector.shape_cast %320 : vector<1x32x32xbf16> to vector<32x32xbf16>
    %322 = arith.index_cast %302 : i32 to index
    %c0_156 = arith.constant 0 : index
    %c0_157 = arith.constant 0 : index
    %323 = vector.load %arg7[%322, %c0_156, %c0_157] : memref<8x32x1xf32, #tpu.memory_space<vmem>>, vector<1x32x1xf32>
    %324 = vector.shape_cast %323 : vector<1x32x1xf32> to vector<32x1xf32>
    %325 = arith.truncf %318 : vector<32x256xf32> to vector<32x256xbf16>
    %cst_158 = arith.constant dense<0.000000e+00> : vector<32x256xf32>
    %326 = tpu.matmul %321, %325, %cst_158 {dimension_numbers = #tpu.dot_dimension_numbers<[1], [0], [0], [1], [0, 0, 1, 1], [], []>} : vector<32x32xbf16>, vector<32x256xbf16>, vector<32x256xf32> -> vector<32x256xf32>
    %327 = vector.broadcast %324 : vector<32x1xf32> to vector<32x256xf32>
    %328 = arith.addf %326, %327 : vector<32x256xf32>
    %cst_159 = arith.constant 0.000000e+00 : f32
    %329 = vector.broadcast %cst_159 : f32 to vector<32x256xf32>
    %330 = arith.maximumf %328, %329 : vector<32x256xf32>
    %331 = arith.index_cast %302 : i32 to index
    %c0_160 = arith.constant 0 : index
    %c0_161 = arith.constant 0 : index
    %332 = vector.load %arg8[%331, %c0_160, %c0_161] : memref<8x32x1xf32, #tpu.memory_space<vmem>>, vector<1x32x1xf32>
    %333 = vector.shape_cast %332 : vector<1x32x1xf32> to vector<32x1xf32>
    %334 = arith.index_cast %302 : i32 to index
    %c0_162 = arith.constant 0 : index
    %c0_163 = arith.constant 0 : index
    %335 = vector.load %arg9[%334, %c0_162, %c0_163] : memref<8x1x1xf32, #tpu.memory_space<vmem>>, vector<1x1x1xf32>
    %336 = vector.shape_cast %335 : vector<1x1x1xf32> to vector<1x1xf32>
    %337 = vector.broadcast %333 : vector<32x1xf32> to vector<32x256xf32>
    %338 = arith.mulf %337, %330 : vector<32x256xf32>
    %cst_164 = arith.constant dense<0.000000e+00> : vector<256xf32>
    %339 = vector.multi_reduction <add>, %338, %cst_164 [0] : vector<32x256xf32> to vector<256xf32>
    %340 = vector.shape_cast %339 : vector<256xf32> to vector<1x256xf32>
    %341 = vector.broadcast %336 : vector<1x1xf32> to vector<1x256xf32>
    %342 = arith.addf %340, %341 : vector<1x256xf32>
    %c7 = arith.constant 7 : index
    %c0_165 = arith.constant 0 : index
    %343 = vector.load %arg10[%c7, %c0_165] : memref<8x256xf32, #tpu.memory_space<vmem>>, vector<1x256xf32>
    tpu.vector_store %arg10[%c7, %c0_165], %342 {strides = array<i32>} : memref<8x256xf32, #tpu.memory_space<vmem>>, vector<1x256xf32>,
    return
  }
  func.func @transform_0(%arg0: i32, %arg1: i32, %arg2: memref<8xi32, #tpu.memory_space<smem>>) -> (i32, i32, i32) {
    %c0_i32 = arith.constant 0 : i32
    %c0_i32_0 = arith.constant 0 : i32
    %c0_i32_1 = arith.constant 0 : i32
    return %c0_i32, %c0_i32_0, %arg0 : i32, i32, i32
  }
  func.func @transform_1(%arg0: i32, %arg1: i32, %arg2: memref<8xi32, #tpu.memory_space<smem>>) -> (i32, i32, i32) {
    %c0_i32 = arith.constant 0 : i32
    %c0_i32_0 = arith.constant 0 : i32
    %c0_i32_1 = arith.constant 0 : i32
    %c0_i32_2 = arith.constant 0 : i32
    return %c0_i32, %c0_i32_0, %c0_i32_1 : i32, i32, i32
  }
  func.func @transform_2(%arg0: i32, %arg1: i32, %arg2: memref<8xi32, #tpu.memory_space<smem>>) -> (i32, i32, i32) {
    %c0_i32 = arith.constant 0 : i32
    %c0_i32_0 = arith.constant 0 : i32
    %c0_i32_1 = arith.constant 0 : i32
    %c0_i32_2 = arith.constant 0 : i32
    return %c0_i32, %c0_i32_0, %c0_i32_1 : i32, i32, i32
  }
  func.func @transform_3(%arg0: i32, %arg1: i32, %arg2: memref<8xi32, #tpu.memory_space<smem>>) -> (i32, i32, i32) {
    %c0_i32 = arith.constant 0 : i32
    %c0_i32_0 = arith.constant 0 : i32
    %c0_i32_1 = arith.constant 0 : i32
    %c0_i32_2 = arith.constant 0 : i32
    return %c0_i32, %c0_i32_0, %c0_i32_1 : i32, i32, i32
  }
  func.func @transform_4(%arg0: i32, %arg1: i32, %arg2: memref<8xi32, #tpu.memory_space<smem>>) -> (i32, i32, i32) {
    %c0_i32 = arith.constant 0 : i32
    %c0_i32_0 = arith.constant 0 : i32
    %c0_i32_1 = arith.constant 0 : i32
    %c0_i32_2 = arith.constant 0 : i32
    return %c0_i32, %c0_i32_0, %c0_i32_1 : i32, i32, i32
  }
  func.func @transform_5(%arg0: i32, %arg1: i32, %arg2: memref<8xi32, #tpu.memory_space<smem>>) -> (i32, i32, i32) {
    %c0_i32 = arith.constant 0 : i32
    %c0_i32_0 = arith.constant 0 : i32
    %c0_i32_1 = arith.constant 0 : i32
    %c0_i32_2 = arith.constant 0 : i32
    return %c0_i32, %c0_i32_0, %c0_i32_1 : i32, i32, i32
  }
  func.func @transform_6(%arg0: i32, %arg1: i32, %arg2: memref<8xi32, #tpu.memory_space<smem>>) -> (i32, i32, i32) {
    %c0_i32 = arith.constant 0 : i32
    %c0_i32_0 = arith.constant 0 : i32
    %c0_i32_1 = arith.constant 0 : i32
    %c0_i32_2 = arith.constant 0 : i32
    return %c0_i32, %c0_i32_0, %c0_i32_1 : i32, i32, i32
  }
  func.func @transform_7(%arg0: i32, %arg1: i32, %arg2: memref<8xi32, #tpu.memory_space<smem>>) -> (i32, i32) {
    %c0_i32 = arith.constant 0 : i32
    return %arg1, %arg0 : i32, i32
  }
}

</mosaic_0001>

<bundles_post_ra>
// kernel: tpu_custom_call.1
= control target key start
LH: loop header
LB: loop body
LE: loop exit
PB: predicated region body
PF: predicated region fallthrough
CT: control target
= control target key end

     0   :  { %s4098_s0 = inlined_call_operand.vmem [shape: s32[8], index: 0, kind: input, shape index: {}]   ;;  %s4099_s1 = inlined_call_operand.vmem [shape: bf16[2,32,256], index: 1, kind: input, shape index: {}]   ;;  %s4100_s2 = inlined_call_operand.vmem [shape: bf16[8,32,32], index: 2, kind: input, shape index: {}]   ;;  %s4101_s3 = inlined_call_operand.vmem [shape: f32[8,32,1], index: 3, kind: input, shape index: {}]   ;;  %s4102_s4 = inlined_call_operand.vmem [shape: bf16[8,32,32], index: 4, kind: input, shape index: {}]   ;;  %s4103_s5 = inlined_call_operand.vmem [shape: f32[8,32,1], index: 5, kind: input, shape index: {}]   ;;  %s4104_s6 = inlined_call_operand.vmem [shape: f32[8,32,1], index: 6, kind: input, shape index: {}]   ;;  %s4105_s7 = inlined_call_operand.vmem [shape: f32[8,1,1], index: 7, kind: input, shape index: {}]   ;;  %s4106_s8 = inlined_call_operand.hbm [shape: f32[8,256], index: 8, kind: output, shape index: {}]  }
   0x1   :  { %s13_s29 = sshll.u32 %s4098_s0, 4  ;;  %s14_s29 = int_to_ptr.vmem [resolvable:$true] %s13_s29 }
   0x2   :  { %s3159_s30 = scalar_lea.vmem %s14_s29, 16  ;;  %p3164_p1 = scmp.lt.s32.totalorder %s14_s29, %s14_s29 }
   0x3   :  { %p3160_p0 = scmp.ne.s32.totalorder %s14_s29, %s3159_s30  ;;  %p3165_p2 = scmp.lt.s32.totalorder %s3159_s30, %s3159_s30 }
   0x5   :  { %p3166_p3 = por %p3165_p2, %p3164_p1 }
   0x7   :  { %p3167_p4 = pnand %p3166_p3, %p3160_p0 }
   0x9   :  { %3170 = shalt.err (!%p3167_p4)  }
   0xa   :  { %s3197_s9 = smov [#allocation3]  }
   0xb   :  { %16 = dma.vmem_to_smem %s14_s29, 16, %s3197_s9, [#allocation2] }
   0xc   :  { %3193 = dma.done.wait [#allocation2], 16 }
   0xd   :  { %3194 = vsyncadd [#allocation2], 4294967280 }
   0xe   :  { %18 = sfence }
   0xf   :  { %v55_v0 = vld [vmem:[%s4101_s3 + $0x10] sm:$0xff]  ;;  %v53_v1 = vld [vmem:[%s4101_s3] sm:$0xff]  ;;  %s36_s0 = sld [smem:[#allocation3]]  ;;  %v3198_v2 = vmov 0   ;;  %s2813_s14 = sld [smem:[#allocation3 + $0x1]]  ;;  %v56_v3 = vld [vmem:[%s4101_s3 + $0x18] sm:$0xff] }
  0x10   :  { %3078 = vset.pattern.permute.xlu1 %v3198_v2  ;;  %3077 = vset.pattern.permute.xlu0 %v3198_v2  ;;  %v54_v4 = vld [vmem:[%s4101_s3 + $0x8] sm:$0xff]  ;;  %s3264_s19 = sld [smem:[#allocation3 + $0x2]]  ;;  %v2820_v6 = vld [vmem:[%s4101_s3 + $0x20] sm:$0xff]  ;;  %s3281_s10 = sld [smem:[#allocation3 + $0x3]]  ;;  %v2823_v10 = vld [vmem:[%s4101_s3 + $0x38] sm:$0xff]  ;;  %vm107_vm0 = vcmask 261120  }
  0x11   :  { %69 = vperm.xlu1 %3078, %v55_v0   ;;  %59 = vperm.xlu0 %3077, %v53_v1   ;;  %v2821_v5 = vld [vmem:[%s4101_s3 + $0x28] sm:$0xff]  ;;  %v2822_v11 = vld [vmem:[%s4101_s3 + $0x30] sm:$0xff]  ;;  %v2856_v15 = vld [vmem:[%s4101_s3 + $0x40] sm:$0xff]  ;;  %s3306_s24 = sld [smem:[#allocation3 + $0x4]]  ;;  %s2957_s17 = sld [smem:[#allocation3 + $0x5]] }
  0x12   :  { %146 = vmatprep.mubr.bf16.mxu0 %v3198_v2  ;;  %258 = vmatprep.mubr.bf16.mxu1 %v3198_v2  ;;  %v2857_v14 = vld [vmem:[%s4101_s3 + $0x48] sm:$0xff]  ;;  %v3085_v16 = vld [vmem:[%s4100_s2] sm:$0xff]   ;;  %v2859_v19 = vld [vmem:[%s4101_s3 + $0x58] sm:$0xff]  ;;  %s3358_s12 = sld [smem:[#allocation3 + $0x6]] }
  0x13   :  { %v2858_v20 = vld [vmem:[%s4101_s3 + $0x50] sm:$0xff]  ;;  %v2893_v23 = vld [vmem:[%s4101_s3 + $0x68] sm:$0xff]  ;;  %v2892_v24 = vld [vmem:[%s4101_s3 + $0x60] sm:$0xff] }
  0x14   :  { %v3089_v25 = vld [vmem:[%s4100_s2 + $0x8] sm:$0xff]   ;;  %v2895_v26 = vld [vmem:[%s4101_s3 + $0x78] sm:$0xff]  ;;  %v2894_v27 = vld [vmem:[%s4101_s3 + $0x70] sm:$0xff] }
  0x15   :  { %74 = vperm.xlu1 %3078, %v56_v3   ;;  %64 = vperm.xlu0 %3077, %v54_v4   ;;  %s3065_s20 = sshll.u32 %s36_s0, 5  ;;  %s3066_s28 = sshll.u32 %s2813_s14, 5  ;;  %v2929_v28 = vld [vmem:[%s4101_s3 + $0x88] sm:$0xff]  ;;  %v2928_v29 = vld [vmem:[%s4101_s3 + $0x80] sm:$0xff]  ;;  %v3093_v30 = vld [vmem:[%s4100_s2 + $0x10] sm:$0xff]  }
  0x16   :  { %s39_s27 = scalar_lea.vmem %s4099_s1, %s3065_s20  ;;  %s3279_s9 = scalar_lea.vmem %s4099_s1, %s3066_s28  ;;  %v2931_v33 = vld [vmem:[%s4101_s3 + $0x98] sm:$0xff]  ;;  %v2930_v34 = vld [vmem:[%s4101_s3 + $0x90] sm:$0xff]  ;;  %v2965_v37 = vld [vmem:[%s4101_s3 + $0xa8] sm:$0xff] }
  0x17   :  { %v3079_v7 = vld [vmem:[%s39_s27 + $0x4] ss:$8 sps:$4 sm:$0xff]   ;;  %v3081_v8 = vld [vmem:[%s39_s27] ss:$8 sps:$4 sm:$0xff]   ;;  %v3082_v9 = vld [vmem:[%s39_s27 + $0x14] ss:$8 sps:$4 sm:$0xff]  }
  0x18   :  { %114 = vmatprep.subr.bf16.mxu0 %v3079_v7  ;;  %s3067_s14 = sshll.u32 %s3264_s19, 5  ;;  %v3084_v12 = vld [vmem:[%s39_s27 + $0x10] ss:$8 sps:$4 sm:$0xff]   ;;  %v3088_v13 = vld [vmem:[%s3279_s9 + $0x4] ss:$8 sps:$4 sm:$0xff]   ;;  %s3068_s25 = sshll.u32 %s3281_s10, 5 }
  0x19   :  { %404 = vperm.xlu1 %3078, %v2821_v5   ;;  %399 = vperm.xlu0 %3077, %v2820_v6   ;;  %s3300_s19 = scalar_lea.vmem %s4099_s1, %s3067_s14  ;;  %v3086_v17 = vld [vmem:[%s3279_s9] ss:$8 sps:$4 sm:$0xff]   ;;  %v3092_v18 = vld [vmem:[%s3279_s9 + $0x14] ss:$8 sps:$4 sm:$0xff]   ;;  %v3090_v21 = vld [vmem:[%s3279_s9 + $0x10] ss:$8 sps:$4 sm:$0xff]   ;;  %s3323_s10 = scalar_lea.vmem %s4099_s1, %s3068_s25 }
  0x1a   :  { %115 = vmatpush1.bf16.msra.mxu0 %v3081_v8  ;;  %v3096_v22 = vld [vmem:[%s3300_s19 + $0x4] ss:$8 sps:$4 sm:$0xff]   ;;  %s3069_s9 = sshll.u32 %s3306_s24, 5  ;;  %v3094_v31 = vld [vmem:[%s3300_s19] ss:$8 sps:$4 sm:$0xff]   ;;  %s3070_s13 = sshll.u32 %s2957_s17, 5 }
  0x1b   :  { %116 = vmatprep.subr.bf16.mxu0 %v3082_v9  ;;  %s3346_s24 = scalar_lea.vmem %s4099_s1, %s3069_s9  ;;  %v3100_v32 = vld [vmem:[%s3300_s19 + $0x14] ss:$8 sps:$4 sm:$0xff]   ;;  %v3098_v35 = vld [vmem:[%s3300_s19 + $0x10] ss:$8 sps:$4 sm:$0xff]   ;;  %s3373_s17 = scalar_lea.vmem %s4099_s1, %s3070_s13  ;;  %v3104_v36 = vld [vmem:[%s3323_s10 + $0x4] ss:$8 sps:$4 sm:$0xff]  }
  0x1c   :  { %v2964_v38 = vld [vmem:[%s4101_s3 + $0xa0] sm:$0xff]  ;;  %s3029_s25 = sld [smem:[#allocation3 + $0x7]]  ;;  %v3097_v39 = vld [vmem:[%s4100_s2 + $0x18] sm:$0xff]   ;;  %s3071_s27 = sshll.u32 %s3358_s12, 5  ;;  %v2966_v41 = vld [vmem:[%s4101_s3 + $0xb0] sm:$0xff] }
  0x1d   :  { %414 = vperm.xlu1 %3078, %v2823_v10   ;;  %409 = vperm.xlu0 %3077, %v2822_v11   ;;  %v2967_v40 = vld [vmem:[%s4101_s3 + $0xb8] sm:$0xff]  ;;  %s3396_s14 = scalar_lea.vmem %s4099_s1, %s3071_s27  ;;  %v3001_v42 = vld [vmem:[%s4101_s3 + $0xc8] sm:$0xff]  ;;  %v3000_v43 = vld [vmem:[%s4101_s3 + $0xc0] sm:$0xff] }
  0x1e   :  { %117 = vmatpush1.bf16.msra.mxu0 %v3084_v12  ;;  %v3101_v44 = vld [vmem:[%s4100_s2 + $0x20] sm:$0xff]   ;;  %v3108_v46 = vld [vmem:[%s3323_s10 + $0x14] ss:$8 sps:$4 sm:$0xff]   ;;  %v3106_v49 = vld [vmem:[%s3323_s10 + $0x10] ss:$8 sps:$4 sm:$0xff]  }
  0x1f   :  { %453 = vmatprep.subr.bf16.mxu0 %v3088_v13  ;;  %v3102_v45 = vld [vmem:[%s3323_s10] ss:$8 sps:$4 sm:$0xff]   ;;  %v3003_v47 = vld [vmem:[%s4101_s3 + $0xd8] sm:$0xff]  ;;  %v3002_v48 = vld [vmem:[%s4101_s3 + $0xd0] sm:$0xff] }
  0x20   :  { %v3112_v50 = vld [vmem:[%s3346_s24 + $0x4] ss:$8 sps:$4 sm:$0xff]   ;;  %v3039_v54 = vld [vmem:[%s4101_s3 + $0xf8] sm:$0xff]  ;;  %v3038_v55 = vld [vmem:[%s4101_s3 + $0xf0] sm:$0xff] }
  0x21   :  { %740 = vperm.xlu1 %3078, %v2857_v14   ;;  %735 = vperm.xlu0 %3077, %v2856_v15   ;;  %v3037_v51 = vld [vmem:[%s4101_s3 + $0xe8] sm:$0xff]  ;;  %v3036_v52 = vld [vmem:[%s4101_s3 + $0xe0] sm:$0xff]  ;;  %v3109_v58 = vld [vmem:[%s4100_s2 + $0x30] sm:$0xff]  }
  0x22   :  { %2807 = vmatmul.mubr.msk.bf16.vlgmr.msra.gmra.mrb[0].mxu0 %vm107_vm0, %v3085_v16  ;;  %s3072_s21 = sshll.u32 %s3029_s25, 5  ;;  %v3105_v53 = vld [vmem:[%s4100_s2 + $0x28] sm:$0xff]   ;;  %v182_v57 = vld [vmem:[%s4103_s5] sm:$0xff]  ;;  %v3116_v60 = vld [vmem:[%s3346_s24 + $0x14] ss:$8 sps:$4 sm:$0xff]  }
  0x23   :  { %454 = vmatpush1.bf16.msra.mxu0 %v3086_v17  ;;  %156 = vmatprep.mubr.bf16.mxu0 %v3198_v2  ;;  %s3413_s26 = scalar_lea.vmem %s4099_s1, %s3072_s21  ;;  %v183_v56 = vld [vmem:[%s4103_s5 + $0x8] sm:$0xff]  ;;  %v185_v61 = vld [vmem:[%s4103_s5 + $0x18] sm:$0xff]  ;;  %v184_v62 = vld [vmem:[%s4103_s5 + $0x10] sm:$0xff] }
  0x24   :  { %455 = vmatprep.subr.bf16.mxu0 %v3092_v18  ;;  %v3110_v59 = vld [vmem:[%s3346_s24] ss:$8 sps:$4 sm:$0xff]   ;;  %v3114_v63 = vld [vmem:[%s3346_s24 + $0x10] ss:$8 sps:$4 sm:$0xff]   ;;  %v3120_v1 = vld [vmem:[%s3373_s17 + $0x4] ss:$8 sps:$4 sm:$0xff]  }
  0x25   :  { %750 = vperm.xlu1 %3078, %v2859_v19   ;;  %745 = vperm.xlu0 %3077, %v2858_v20   ;;  %v289_v0 = vld [vmem:[%s4104_s6 + $0x8] sm:$0xff]  ;;  %v288_v3 = vld [vmem:[%s4104_s6] sm:$0xff]  ;;  %v3113_v4 = vld [vmem:[%s4100_s2 + $0x38] sm:$0xff]  }
  0x26   :  { %v291_v5 = vld [vmem:[%s4104_s6 + $0x18] sm:$0xff]  ;;  %v290_v6 = vld [vmem:[%s4104_s6 + $0x10] sm:$0xff]  ;;  %v2836_v7 = vld [vmem:[%s4103_s5 + $0x20] sm:$0xff] }
  0x27   :  { %456 = vmatpush1.bf16.msra.mxu0 %v3090_v21  ;;  %v293_v8 = vld [vmem:[%s4105_s7] sm:$0x1]  ;;  %v3124_v11 = vld [vmem:[%s3373_s17 + $0x14] ss:$8 sps:$4 sm:$0xff]   ;;  %v2837_v13 = vld [vmem:[%s4103_s5 + $0x28] sm:$0xff] }
  0x28   :  { %789 = vmatprep.subr.bf16.mxu0 %v3096_v22  ;;  %v3117_v9 = vld [vmem:[%s4100_s2 + $0x40] sm:$0xff]   ;;  %v2838_v12 = vld [vmem:[%s4103_s5 + $0x30] sm:$0xff] }
  0x29   :  { %1076 = vperm.xlu1 %3078, %v2893_v23   ;;  %1071 = vperm.xlu0 %3077, %v2892_v24   ;;  %v3118_v10 = vld [vmem:[%s3373_s17] ss:$8 sps:$4 sm:$0xff]  }
  0x2a   :  { %2808 = vmatmul.mubr.msk.bf16.gmra.mrb[4].mxu0 %vm107_vm0, %v3089_v25 }
  0x2b   :  { %485 = vmatprep.mubr.bf16.mxu0 %v3198_v2 }
  0x2d   :  { %1086 = vperm.xlu1 %3078, %v2895_v26   ;;  %1081 = vperm.xlu0 %3077, %v2894_v27  }
  0x31   :  { %1412 = vperm.xlu1 %3078, %v2929_v28   ;;  %1407 = vperm.xlu0 %3077, %v2928_v29  }
  0x32   :  { %2830 = vmatmul.mubr.msk.bf16.vlgmr.msra.gmra.mrb[8].mxu0 %vm107_vm0, %v3093_v30 }
  0x33   :  { %790 = vmatpush1.bf16.msra.mxu0 %v3094_v31  ;;  %495 = vmatprep.mubr.bf16.mxu0 %v3198_v2 }
  0x34   :  { %791 = vmatprep.subr.bf16.mxu0 %v3100_v32 }
  0x35   :  { %1422 = vperm.xlu1 %3078, %v2931_v33   ;;  %1417 = vperm.xlu0 %3077, %v2930_v34  }
  0x37   :  { %792 = vmatpush1.bf16.msra.mxu0 %v3098_v35 }
  0x38   :  { %1125 = vmatprep.subr.bf16.mxu0 %v3104_v36 }
  0x39   :  { %1748 = vperm.xlu1 %3078, %v2965_v37   ;;  %1743 = vperm.xlu0 %3077, %v2964_v38  }
  0x3a   :  { %2831 = vmatmul.mubr.msk.bf16.gmra.mrb[12].mxu0 %vm107_vm0, %v3097_v39 }
  0x3b   :  { %821 = vmatprep.mubr.bf16.mxu0 %v3198_v2 }
  0x3d   :  { %1758 = vperm.xlu1 %3078, %v2967_v40   ;;  %1753 = vperm.xlu0 %3077, %v2966_v41  }
  0x41   :  { %2084 = vperm.xlu1 %3078, %v3001_v42   ;;  %2079 = vperm.xlu0 %3077, %v3000_v43  }
  0x42   :  { %2866 = vmatmul.mubr.msk.bf16.vlgmr.msra.gmra.mrb[16].mxu0 %vm107_vm0, %v3101_v44 }
  0x43   :  { %1126 = vmatpush1.bf16.msra.mxu0 %v3102_v45  ;;  %831 = vmatprep.mubr.bf16.mxu0 %v3198_v2 }
  0x44   :  { %1127 = vmatprep.subr.bf16.mxu0 %v3108_v46 }
  0x45   :  { %2094 = vperm.xlu1 %3078, %v3003_v47   ;;  %2089 = vperm.xlu0 %3077, %v3002_v48  }
  0x47   :  { %1128 = vmatpush1.bf16.msra.mxu0 %v3106_v49 }
  0x48   :  { %1461 = vmatprep.subr.bf16.mxu0 %v3112_v50 }
  0x49   :  { %2420 = vperm.xlu1 %3078, %v3037_v51   ;;  %2415 = vperm.xlu0 %3077, %v3036_v52  }
  0x4a   :  { %2867 = vmatmul.mubr.msk.bf16.gmra.mrb[20].mxu0 %vm107_vm0, %v3105_v53 }
  0x4b   :  { %1157 = vmatprep.mubr.bf16.mxu0 %v3198_v2 }
  0x4d   :  { %2430 = vperm.xlu1 %3078, %v3039_v54   ;;  %2425 = vperm.xlu0 %3077, %v3038_v55  }
  0x51   :  { %197 = vperm.xlu1 %3078, %v183_v56   ;;  %192 = vperm.xlu0 %3077, %v182_v57  }
  0x52   :  { %2902 = vmatmul.mubr.msk.bf16.vlgmr.msra.gmra.mrb[24].mxu0 %vm107_vm0, %v3109_v58 }
  0x53   :  { %1462 = vmatpush1.bf16.msra.mxu0 %v3110_v59  ;;  %1167 = vmatprep.mubr.bf16.mxu0 %v3198_v2 }
  0x54   :  { %1463 = vmatprep.subr.bf16.mxu0 %v3116_v60 }
  0x55   :  { %207 = vperm.xlu1 %3078, %v185_v61   ;;  %202 = vperm.xlu0 %3077, %v184_v62  }
  0x57   :  { %1464 = vmatpush1.bf16.msra.mxu0 %v3114_v63 }
  0x58   :  { %1797 = vmatprep.subr.bf16.mxu0 %v3120_v1 }
  0x59   :  { %301 = vperm.xlu1 %3078, %v289_v0   ;;  %296 = vperm.xlu0 %3077, %v288_v3  }
  0x5a   :  { %2903 = vmatmul.mubr.msk.bf16.gmra.mrb[28].mxu0 %vm107_vm0, %v3113_v4 }
  0x5b   :  { %1493 = vmatprep.mubr.bf16.mxu0 %v3198_v2 }
  0x5d   :  { %311 = vperm.xlu1 %3078, %v291_v5   ;;  %306 = vperm.xlu0 %3077, %v290_v6  }
  0x61   :  { %531 = vperm.xlu1 %3078, %v2836_v7   ;;  %342 = vperm.xlu0 %3077, %v293_v8  }
  0x62   :  { %2938 = vmatmul.mubr.msk.bf16.vlgmr.msra.gmra.mrb[32].mxu0 %vm107_vm0, %v3117_v9 }
  0x63   :  { %19 = vsyncpa [#allocation5], 0  ;;  %1798 = vmatpush1.bf16.msra.mxu0 %v3118_v10  ;;  %1503 = vmatprep.mubr.bf16.mxu0 %v3198_v2  ;;  %v3122_v14 = vld [vmem:[%s3373_s17 + $0x10] ss:$8 sps:$4 sm:$0xff]   ;;  %v3128_v15 = vld [vmem:[%s3396_s14 + $0x4] ss:$8 sps:$4 sm:$0xff]  }
  0x64   :  { %1799 = vmatprep.subr.bf16.mxu0 %v3124_v11  ;;  %v2844_v16 = vld [vmem:[%s4104_s6 + $0x20] sm:$0xff]  ;;  %v2839_v17 = vld [vmem:[%s4103_s5 + $0x38] sm:$0xff]  ;;  %v3121_v18 = vld [vmem:[%s4100_s2 + $0x48] sm:$0xff]  }
  0x65   :  { %541 = vperm.xlu1 %3078, %v2838_v12   ;;  %536 = vperm.xlu0 %3077, %v2837_v13   ;;  %v2846_v19 = vld [vmem:[%s4104_s6 + $0x30] sm:$0xff]  ;;  %v2845_v20 = vld [vmem:[%s4104_s6 + $0x28] sm:$0xff]  ;;  %v2848_v21 = vld [vmem:[%s4105_s7 + $0x1] sm:$0x1] }
  0x66   :  { %v2847_v22 = vld [vmem:[%s4104_s6 + $0x38] sm:$0xff]  ;;  %v3125_v23 = vld [vmem:[%s4100_s2 + $0x50] sm:$0xff]   ;;  %v3126_v24 = vld [vmem:[%s3396_s14] ss:$8 sps:$4 sm:$0xff]  }
  0x67   :  { %1800 = vmatpush1.bf16.msra.mxu0 %v3122_v14  ;;  %v3132_v25 = vld [vmem:[%s3396_s14 + $0x14] ss:$8 sps:$4 sm:$0xff]   ;;  %v2873_v26 = vld [vmem:[%s4103_s5 + $0x48] sm:$0xff]  ;;  %v2872_v27 = vld [vmem:[%s4103_s5 + $0x40] sm:$0xff] }
  0x68   :  { %2133 = vmatprep.subr.bf16.mxu0 %v3128_v15  ;;  %v3130_v28 = vld [vmem:[%s3396_s14 + $0x10] ss:$8 sps:$4 sm:$0xff]   ;;  %v3136_v29 = vld [vmem:[%s3413_s26 + $0x4] ss:$8 sps:$4 sm:$0xff]   ;;  %v3134_v38 = vld [vmem:[%s3413_s26] ss:$8 sps:$4 sm:$0xff]  }
  0x69   :  { %635 = vperm.xlu1 %3078, %v2844_v16   ;;  %546 = vperm.xlu0 %3077, %v2839_v17   ;;  %v2875_v30 = vld [vmem:[%s4103_s5 + $0x58] sm:$0xff]  ;;  %v2874_v31 = vld [vmem:[%s4103_s5 + $0x50] sm:$0xff]  ;;  %v2881_v33 = vld [vmem:[%s4104_s6 + $0x48] sm:$0xff] }
  0x6a   :  { %2939 = vmatmul.mubr.msk.bf16.gmra.mrb[36].mxu0 %vm107_vm0, %v3121_v18  ;;  %v3129_v32 = vld [vmem:[%s4100_s2 + $0x58] sm:$0xff]   ;;  %v2880_v34 = vld [vmem:[%s4104_s6 + $0x40] sm:$0xff]  ;;  %v2882_v36 = vld [vmem:[%s4104_s6 + $0x50] sm:$0xff] }
  0x6b   :  { %1829 = vmatprep.mubr.bf16.mxu0 %v3198_v2  ;;  %v2883_v35 = vld [vmem:[%s4104_s6 + $0x58] sm:$0xff]  ;;  %v3133_v37 = vld [vmem:[%s4100_s2 + $0x60] sm:$0xff]   ;;  %v2910_v43 = vld [vmem:[%s4103_s5 + $0x70] sm:$0xff] }
  0x6c   :  { %v3140_v39 = vld [vmem:[%s3413_s26 + $0x14] ss:$8 sps:$4 sm:$0xff]   ;;  %v2908_v40 = vld [vmem:[%s4103_s5 + $0x60] sm:$0xff]  ;;  %v3138_v42 = vld [vmem:[%s3413_s26 + $0x10] ss:$8 sps:$4 sm:$0xff]  }
  0x6d   :  { %645 = vperm.xlu1 %3078, %v2846_v19   ;;  %640 = vperm.xlu0 %3077, %v2845_v20   ;;  %v2884_v41 = vld [vmem:[%s4105_s7 + $0x2] sm:$0x1]  ;;  %v2909_v44 = vld [vmem:[%s4103_s5 + $0x68] sm:$0xff]  ;;  %v2911_v47 = vld [vmem:[%s4103_s5 + $0x78] sm:$0xff] }
  0x6e   :  { %v3137_v45 = vld [vmem:[%s4100_s2 + $0x68] sm:$0xff]   ;;  %v2916_v46 = vld [vmem:[%s4104_s6 + $0x60] sm:$0xff]  ;;  %v2918_v48 = vld [vmem:[%s4104_s6 + $0x70] sm:$0xff] }
  0x6f   :  { %v2917_v49 = vld [vmem:[%s4104_s6 + $0x68] sm:$0xff]  ;;  %v3141_v50 = vld [vmem:[%s4100_s2 + $0x70] sm:$0xff]   ;;  %v2920_v51 = vld [vmem:[%s4105_s7 + $0x3] sm:$0x1] }
  0x70   :  { %v2919_v52 = vld [vmem:[%s4104_s6 + $0x78] sm:$0xff]  ;;  %v2945_v53 = vld [vmem:[%s4103_s5 + $0x88] sm:$0xff]  ;;  %v2944_v54 = vld [vmem:[%s4103_s5 + $0x80] sm:$0xff] }
  0x71   :  { %681 = vperm.xlu1 %3078, %v2848_v21   ;;  %650 = vperm.xlu0 %3077, %v2847_v22   ;;  %v3142_v55 = vld [vmem:[%s4100_s2 + $0x78] sm:$0xff]   ;;  %v2946_v57 = vld [vmem:[%s4103_s5 + $0x90] sm:$0xff]  ;;  %v2953_v58 = vld [vmem:[%s4104_s6 + $0x88] sm:$0xff] }
  0x72   :  { %2974 = vmatmul.mubr.msk.bf16.vlgmr.msra.gmra.mrb[40].mxu0 %vm107_vm0, %v3125_v23  ;;  %v2947_v56 = vld [vmem:[%s4103_s5 + $0x98] sm:$0xff]  ;;  %v2952_v59 = vld [vmem:[%s4104_s6 + $0x80] sm:$0xff]  ;;  %v2954_v61 = vld [vmem:[%s4104_s6 + $0x90] sm:$0xff] }
  0x73   :  { %2134 = vmatpush1.bf16.msra.mxu0 %v3126_v24  ;;  %1839 = vmatprep.mubr.bf16.mxu0 %v3198_v2  ;;  %v2955_v60 = vld [vmem:[%s4104_s6 + $0x98] sm:$0xff]  ;;  %v2980_v62 = vld [vmem:[%s4103_s5 + $0xa0] sm:$0xff]  ;;  %v2982_v0 = vld [vmem:[%s4103_s5 + $0xb0] sm:$0xff] }
  0x74   :  { %2135 = vmatprep.subr.bf16.mxu0 %v3132_v25  ;;  %v2956_v63 = vld [vmem:[%s4105_s7 + $0x4] sm:$0x1]  ;;  %v2981_v1 = vld [vmem:[%s4103_s5 + $0xa8] sm:$0xff]  ;;  %v3054_v7 = vld [vmem:[%s4103_s5 + $0xf0] sm:$0xff] }
  0x75   :  { %872 = vperm.xlu1 %3078, %v2873_v26   ;;  %867 = vperm.xlu0 %3077, %v2872_v27   ;;  %v3017_v3 = vld [vmem:[%s4103_s5 + $0xc8] sm:$0xff]  ;;  %v3016_v4 = vld [vmem:[%s4103_s5 + $0xc0] sm:$0xff]  ;;  %v3018_v8 = vld [vmem:[%s4103_s5 + $0xd0] sm:$0xff] }
  0x76   :  { %v3053_v5 = vld [vmem:[%s4103_s5 + $0xe8] sm:$0xff]  ;;  %v3052_v6 = vld [vmem:[%s4103_s5 + $0xe0] sm:$0xff]  ;;  %v2983_v10 = vld [vmem:[%s4103_s5 + $0xb8] sm:$0xff] }
  0x77   :  { %2136 = vmatpush1.bf16.msra.mxu0 %v3130_v28  ;;  %v2988_v9 = vld [vmem:[%s4104_s6 + $0xa0] sm:$0xff]  ;;  %v3019_v11 = vld [vmem:[%s4103_s5 + $0xd8] sm:$0xff]  ;;  %v2989_v12 = vld [vmem:[%s4104_s6 + $0xa8] sm:$0xff] }
  0x78   :  { %2469 = vmatprep.subr.bf16.mxu0 %v3136_v29  ;;  %v3025_v13 = vld [vmem:[%s4104_s6 + $0xc8] sm:$0xff]  ;;  %v3024_v14 = vld [vmem:[%s4104_s6 + $0xc0] sm:$0xff]  ;;  %v3055_v16 = vld [vmem:[%s4103_s5 + $0xf8] sm:$0xff] }
  0x79   :  { %882 = vperm.xlu1 %3078, %v2875_v30   ;;  %877 = vperm.xlu0 %3077, %v2874_v31   ;;  %v3060_v15 = vld [vmem:[%s4104_s6 + $0xe0] sm:$0xff]  ;;  %v2990_v17 = vld [vmem:[%s4104_s6 + $0xb0] sm:$0xff]  ;;  %v3061_v18 = vld [vmem:[%s4104_s6 + $0xe8] sm:$0xff] }
  0x7a   :  { %2975 = vmatmul.mubr.msk.bf16.gmra.mrb[44].mxu0 %vm107_vm0, %v3129_v32  ;;  %v3062_v19 = vld [vmem:[%s4104_s6 + $0xf0] sm:$0xff]  ;;  %v3027_v23 = vld [vmem:[%s4104_s6 + $0xd8] sm:$0xff]  ;;  %v2992_v25 = vld [vmem:[%s4105_s7 + $0x5] sm:$0x1] }
  0x7b   :  { %2165 = vmatprep.mubr.bf16.mxu0 %v3198_v2  ;;  %v3026_v20 = vld [vmem:[%s4104_s6 + $0xd0] sm:$0xff]  ;;  %v2991_v24 = vld [vmem:[%s4104_s6 + $0xb8] sm:$0xff]  ;;  %v3064_v29 = vld [vmem:[%s4105_s7 + $0x7] sm:$0x1] }
  0x7c   :  { %v3063_v26 = vld [vmem:[%s4104_s6 + $0xf8] sm:$0xff]  ;;  %v3028_v30 = vld [vmem:[%s4105_s7 + $0x6] sm:$0x1] }
  0x7d   :  { %976 = vperm.xlu1 %3078, %v2881_v33   ;;  %971 = vperm.xlu0 %3077, %v2880_v34  }
  0x81   :  { %986 = vperm.xlu1 %3078, %v2883_v35   ;;  %981 = vperm.xlu0 %3077, %v2882_v36  }
  0x82   :  { %3010 = vmatmul.mubr.msk.bf16.vlgmr.msra.gmra.mrb[48].mxu0 %vm107_vm0, %v3133_v37 }
  0x83   :  { %2470 = vmatpush1.bf16.msra.mxu0 %v3134_v38  ;;  %2175 = vmatprep.mubr.bf16.mxu0 %v3198_v2 }
  0x84   :  { %2471 = vmatprep.subr.bf16.mxu0 %v3140_v39 }
  0x85   :  { %1203 = vperm.xlu1 %3078, %v2908_v40   ;;  %1017 = vperm.xlu0 %3077, %v2884_v41  }
  0x87   :  { %2472 = vmatpush1.bf16.msra.mxu0 %v3138_v42 }
  0x89   :  { %1213 = vperm.xlu1 %3078, %v2910_v43   ;;  %1208 = vperm.xlu0 %3077, %v2909_v44  }
  0x8a   :  { %3011 = vmatmul.mubr.msk.bf16.gmra.mrb[52].mxu0 %vm107_vm0, %v3137_v45 }
  0x8b   :  { %2501 = vmatprep.mubr.bf16.mxu0 %v3198_v2 }
  0x8d   :  { %1307 = vperm.xlu1 %3078, %v2916_v46   ;;  %1218 = vperm.xlu0 %3077, %v2911_v47  }
  0x90   :  { %v70_v21 = vpop.permute.xlu1 %69  ;;  %v60_v22 = vpop.permute.xlu0 %59 }
  0x91   :  { %1317 = vperm.xlu1 %3078, %v2918_v48   ;;  %1312 = vperm.xlu0 %3077, %v2917_v49  }
  0x92   :  { %3046 = vmatmul.mubr.msk.bf16.vlgmr.msra.gmra.mrb[56].mxu0 %vm107_vm0, %v3141_v50 }
  0x93   :  { %2511 = vmatprep.mubr.bf16.mxu0 %v3198_v2 }
  0x94   :  { %v75_v27 = vpop.permute.xlu1 %74  ;;  %v65_v28 = vpop.permute.xlu0 %64 }
  0x95   :  { %1353 = vperm.xlu1 %3078, %v2920_v51   ;;  %1322 = vperm.xlu0 %3077, %v2919_v52  }
  0x98   :  { %v405_v31 = vpop.permute.xlu1 %404  ;;  %v400_v32 = vpop.permute.xlu0 %399 }
  0x99   :  { %1544 = vperm.xlu1 %3078, %v2945_v53   ;;  %1539 = vperm.xlu0 %3077, %v2944_v54  }
  0x9a   :  { %3047 = vmatmul.mubr.msk.bf16.gmra.mrb[60].mxu0 %vm107_vm0, %v3142_v55 }
  0x9d   :  { %1554 = vperm.xlu1 %3078, %v2947_v56   ;;  %1549 = vperm.xlu0 %3077, %v2946_v57  }
  0xa1   :  { %1648 = vperm.xlu1 %3078, %v2953_v58   ;;  %1643 = vperm.xlu0 %3077, %v2952_v59  }
  0xa5   :  { %1658 = vperm.xlu1 %3078, %v2955_v60   ;;  %1653 = vperm.xlu0 %3077, %v2954_v61  }
  0xa9   :  { %1875 = vperm.xlu1 %3078, %v2980_v62   ;;  %1689 = vperm.xlu0 %3077, %v2956_v63  }
  0xad   :  { %1885 = vperm.xlu1 %3078, %v2982_v0   ;;  %1880 = vperm.xlu0 %3077, %v2981_v1  }
  0xb1   :  { %2216 = vperm.xlu1 %3078, %v3017_v3   ;;  %2211 = vperm.xlu0 %3077, %v3016_v4   ;;  %v3143_v4 = vld [vmem:[%s4102_s4] sm:$0xff]  }
  0xb5   :  { %2552 = vperm.xlu1 %3078, %v3053_v5   ;;  %2547 = vperm.xlu0 %3077, %v3052_v6  }
  0xb9   :  { %2557 = vperm.xlu1 %3078, %v3054_v7   ;;  %2221 = vperm.xlu0 %3077, %v3018_v8  }
  0xbd   :  { %1979 = vperm.xlu1 %3078, %v2988_v9   ;;  %1890 = vperm.xlu0 %3077, %v2983_v10  }
  0xc1   :  { %2226 = vperm.xlu1 %3078, %v3019_v11   ;;  %1984 = vperm.xlu0 %3077, %v2989_v12   ;;  %v410_v12 = vpop.permute.xlu0 %409 }
  0xc5   :  { %2320 = vperm.xlu1 %3078, %v3025_v13   ;;  %2315 = vperm.xlu0 %3077, %v3024_v14  }
  0xc9   :  { %2651 = vperm.xlu1 %3078, %v3060_v15   ;;  %2562 = vperm.xlu0 %3077, %v3055_v16  }
  0xcd   :  { %1989 = vperm.xlu1 %3078, %v2990_v17   ;;  %2656 = vperm.xlu0 %3077, %v3061_v18   ;;  %v415_v17 = vpop.permute.xlu1 %414 }
  0xd1   :  { %2661 = vperm.xlu1 %3078, %v3062_v19   ;;  %2325 = vperm.xlu0 %3077, %v3026_v20  }
  0xd5   :  { %2330 = vperm.xlu1 %3078, %v3027_v23   ;;  %1994 = vperm.xlu0 %3077, %v2991_v24  }
  0xd9   :  { %2025 = vperm.xlu1 %3078, %v2992_v25   ;;  %2666 = vperm.xlu0 %3077, %v3063_v26  }
  0xdd   :  { %2697 = vperm.xlu1 %3078, %v3064_v29   ;;  %2361 = vperm.xlu0 %3077, %v3028_v30   ;;  %v736_v29 = vpop.permute.xlu0 %735 }
  0xf5   :  { %v148_v33 = vpop.f32.mrb[0].mxu0 }
  0xf6   :  { %v149_v34 = vadd.f32 %v148_v33, %v60_v22  ;;  %v150_v35 = vpop.f32.mrb[1].mxu0 }
  0xf7   :  { %v152_v36 = vpop.f32.mrb[2].mxu0  ;;  %v151_v37 = vadd.f32 %v150_v35, %v60_v22 }
  0xf8   :  { %v153_v38 = vadd.f32 %v152_v36, %v65_v28  ;;  %v154_v39 = vpop.f32.mrb[3].mxu0  ;;  %v167_v40 = vmax.f32 %v149_v34, 0.0  ;;  %v741_v34 = vpop.permute.xlu1 %740 }
  0xf9   :  { %v155_v42 = vadd.f32 %v154_v39, %v65_v28  ;;  %v168_v43 = vmax.f32 %v151_v37, 0.0 }
  0xfa   :  { %v169_v41 = vmax.f32 %v153_v38, 0.0  ;;  %v3145_v38 = vld [vmem:[%s4102_s4 + $0x10] sm:$0xff]  }
  0xfb   :  { %v170_v44 = vmax.f32 %v155_v42, 0.0 }
  0xfc   :  { %v186_v45 = vpack.c.bf16 %v169_v41, %v167_v40 }
  0xfd   :  { %v158_v46 = vpop.f32.mrb[4].mxu0  ;;  %v187_v49 = vpack.c.bf16 %v170_v44, %v168_v43 }
  0xfe   :  { %v159_v47 = vadd.f32 %v158_v46, %v70_v21  ;;  %v160_v48 = vpop.f32.mrb[5].mxu0  ;;  %v746_v46 = vpop.permute.xlu0 %745 }
  0xff   :  { %v162_v50 = vpop.f32.mrb[6].mxu0  ;;  %v161_v51 = vadd.f32 %v160_v48, %v70_v21  ;;  %226 = vmatprep.subr.bf16.mxu1 %v187_v49  ;;  %v3144_v21 = vld [vmem:[%s4102_s4 + $0x8] sm:$0xff]  }
 0x100   :  { %v163_v52 = vadd.f32 %v162_v50, %v75_v27  ;;  %v164_v53 = vpop.f32.mrb[7].mxu0  ;;  %227 = vmatpush1.bf16.msra.mxu1 %v186_v45  ;;  %v171_v54 = vmax.f32 %v159_v47, 0.0 }
 0x101   :  { %v165_v56 = vadd.f32 %v164_v53, %v75_v27  ;;  %v172_v57 = vmax.f32 %v161_v51, 0.0  ;;  %v751_v51 = vpop.permute.xlu1 %750 }
 0x102   :  { %v173_v55 = vmax.f32 %v163_v52, 0.0 }
 0x103   :  { %v174_v59 = vmax.f32 %v165_v56, 0.0 }
 0x104   :  { %v188_v58 = vpack.c.bf16 %v173_v55, %v171_v54  ;;  %v3146_v55 = vld [vmem:[%s4102_s4 + $0x18] sm:$0xff]  }
 0x105   :  { %v487_v60 = vpop.f32.mrb[8].mxu0  ;;  %v189_v61 = vpack.c.bf16 %v174_v59, %v172_v57 }
 0x106   :  { %v488_v62 = vadd.f32 %v487_v60, %v400_v32  ;;  %v489_v63 = vpop.f32.mrb[9].mxu0 }
 0x107   :  { %v491_v0 = vpop.f32.mrb[10].mxu0  ;;  %v490_v1 = vadd.f32 %v489_v63, %v400_v32  ;;  %228 = vmatprep.subr.bf16.mxu1 %v189_v61  ;;  %v1072_v63 = vpop.permute.xlu0 %1071 }
 0x108   :  { %v492_v3 = vadd.f32 %v491_v0, %v405_v31  ;;  %229 = vmatpush1.bf16.msra.mxu1 %v188_v58  ;;  %v493_v5 = vpop.f32.mrb[11].mxu0  ;;  %v506_v6 = vmax.f32 %v488_v62, 0.0 }
 0x109   :  { %v494_v8 = vadd.f32 %v493_v5, %v405_v31  ;;  %v507_v9 = vmax.f32 %v490_v1, 0.0  ;;  %v1077_v5 = vpop.permute.xlu1 %1076 }
 0x10a   :  { %v508_v7 = vmax.f32 %v492_v3, 0.0 }
 0x10b   :  { %v509_v11 = vmax.f32 %v494_v8, 0.0  ;;  %2811 = vmatmul.mubr.msk.bf16.vlgmr.msra.gmra.mrb[0].mxu1 %vm107_vm0, %v3143_v4 }
 0x10c   :  { %v525_v10 = vpack.c.bf16 %v508_v7, %v506_v6  ;;  %268 = vmatprep.mubr.bf16.mxu1 %v3198_v2 }
 0x10d   :  { %v497_v13 = vpop.f32.mrb[12].mxu0  ;;  %v526_v14 = vpack.c.bf16 %v509_v11, %v507_v9  ;;  %v3147_v9 = vld [vmem:[%s4102_s4 + $0x20] sm:$0xff]  }
 0x10e   :  { %v498_v15 = vadd.f32 %v497_v13, %v410_v12  ;;  %v499_v16 = vpop.f32.mrb[13].mxu0 }
 0x10f   :  { %v501_v18 = vpop.f32.mrb[14].mxu0  ;;  %v500_v19 = vadd.f32 %v499_v16, %v410_v12  ;;  %565 = vmatprep.subr.bf16.mxu1 %v526_v14 }
 0x110   :  { %v502_v20 = vadd.f32 %v501_v18, %v415_v17  ;;  %v503_v22 = vpop.f32.mrb[15].mxu0  ;;  %566 = vmatpush1.bf16.msra.mxu1 %v525_v10  ;;  %v510_v23 = vmax.f32 %v498_v15, 0.0 }
 0x111   :  { %v504_v25 = vadd.f32 %v503_v22, %v415_v17  ;;  %v511_v26 = vmax.f32 %v500_v19, 0.0  ;;  %v1082_v17 = vpop.permute.xlu0 %1081  ;;  %v1087_v22 = vpop.permute.xlu1 %1086 }
 0x112   :  { %v512_v24 = vmax.f32 %v502_v20, 0.0 }
 0x113   :  { %v513_v28 = vmax.f32 %v504_v25, 0.0  ;;  %2812 = vmatmul.mubr.msk.bf16.gmra.mrb[4].mxu1 %vm107_vm0, %v3144_v21 }
 0x114   :  { %v527_v27 = vpack.c.bf16 %v512_v24, %v510_v23  ;;  %597 = vmatprep.mubr.bf16.mxu1 %v3198_v2 }
 0x115   :  { %v823_v30 = vpop.f32.mrb[16].mxu0  ;;  %v528_v31 = vpack.c.bf16 %v513_v28, %v511_v26  ;;  %v3148_v26 = vld [vmem:[%s4102_s4 + $0x28] sm:$0xff]  }
 0x116   :  { %v824_v32 = vadd.f32 %v823_v30, %v736_v29  ;;  %v825_v33 = vpop.f32.mrb[17].mxu0 }
 0x117   :  { %v827_v35 = vpop.f32.mrb[18].mxu0  ;;  %v826_v36 = vadd.f32 %v825_v33, %v736_v29  ;;  %567 = vmatprep.subr.bf16.mxu1 %v528_v31 }
 0x118   :  { %v828_v37 = vadd.f32 %v827_v35, %v741_v34  ;;  %568 = vmatpush1.bf16.msra.mxu1 %v527_v27  ;;  %v829_v39 = vpop.f32.mrb[19].mxu0  ;;  %v842_v40 = vmax.f32 %v824_v32, 0.0 }
 0x119   :  { %v830_v42 = vadd.f32 %v829_v39, %v741_v34  ;;  %v843_v43 = vmax.f32 %v826_v36, 0.0  ;;  %v1408_v34 = vpop.permute.xlu0 %1407  ;;  %v1413_v39 = vpop.permute.xlu1 %1412 }
 0x11a   :  { %v844_v41 = vmax.f32 %v828_v37, 0.0 }
 0x11b   :  { %v845_v45 = vmax.f32 %v830_v42, 0.0  ;;  %2842 = vmatmul.mubr.msk.bf16.vlgmr.msra.gmra.mrb[8].mxu1 %vm107_vm0, %v3145_v38 }
 0x11c   :  { %v861_v44 = vpack.c.bf16 %v844_v41, %v842_v40  ;;  %607 = vmatprep.mubr.bf16.mxu1 %v3198_v2 }
 0x11d   :  { %v833_v47 = vpop.f32.mrb[20].mxu0  ;;  %v862_v48 = vpack.c.bf16 %v845_v45, %v843_v43  ;;  %v3149_v43 = vld [vmem:[%s4102_s4 + $0x30] sm:$0xff]  }
 0x11e   :  { %v834_v49 = vadd.f32 %v833_v47, %v746_v46  ;;  %v835_v50 = vpop.f32.mrb[21].mxu0 }
 0x11f   :  { %v837_v52 = vpop.f32.mrb[22].mxu0  ;;  %v836_v53 = vadd.f32 %v835_v50, %v746_v46  ;;  %901 = vmatprep.subr.bf16.mxu1 %v862_v48 }
 0x120   :  { %v838_v54 = vadd.f32 %v837_v52, %v751_v51  ;;  %v839_v56 = vpop.f32.mrb[23].mxu0  ;;  %902 = vmatpush1.bf16.msra.mxu1 %v861_v44  ;;  %v846_v57 = vmax.f32 %v834_v49, 0.0 }
 0x121   :  { %v840_v59 = vadd.f32 %v839_v56, %v751_v51  ;;  %v847_v60 = vmax.f32 %v836_v53, 0.0  ;;  %v1418_v51 = vpop.permute.xlu0 %1417  ;;  %v1423_v56 = vpop.permute.xlu1 %1422 }
 0x122   :  { %v848_v58 = vmax.f32 %v838_v54, 0.0 }
 0x123   :  { %v849_v62 = vmax.f32 %v840_v59, 0.0  ;;  %2843 = vmatmul.mubr.msk.bf16.gmra.mrb[12].mxu1 %vm107_vm0, %v3146_v55 }
 0x124   :  { %v863_v61 = vpack.c.bf16 %v848_v58, %v846_v57  ;;  %933 = vmatprep.mubr.bf16.mxu1 %v3198_v2 }
 0x125   :  { %v1159_v0 = vpop.f32.mrb[24].mxu0  ;;  %v864_v1 = vpack.c.bf16 %v849_v62, %v847_v60  ;;  %v3150_v60 = vld [vmem:[%s4102_s4 + $0x38] sm:$0xff]  }
 0x126   :  { %v1160_v3 = vadd.f32 %v1159_v0, %v1072_v63  ;;  %v1161_v4 = vpop.f32.mrb[25].mxu0 }
 0x127   :  { %v1163_v6 = vpop.f32.mrb[26].mxu0  ;;  %v1162_v7 = vadd.f32 %v1161_v4, %v1072_v63  ;;  %903 = vmatprep.subr.bf16.mxu1 %v864_v1 }
 0x128   :  { %v1164_v8 = vadd.f32 %v1163_v6, %v1077_v5  ;;  %904 = vmatpush1.bf16.msra.mxu1 %v863_v61  ;;  %v1165_v10 = vpop.f32.mrb[27].mxu0  ;;  %v1178_v11 = vmax.f32 %v1160_v3, 0.0 }
 0x129   :  { %v1166_v13 = vadd.f32 %v1165_v10, %v1077_v5  ;;  %v1179_v14 = vmax.f32 %v1162_v7, 0.0  ;;  %v1744_v5 = vpop.permute.xlu0 %1743  ;;  %v1749_v10 = vpop.permute.xlu1 %1748 }
 0x12a   :  { %v1180_v12 = vmax.f32 %v1164_v8, 0.0 }
 0x12b   :  { %v1181_v16 = vmax.f32 %v1166_v13, 0.0  ;;  %2878 = vmatmul.mubr.msk.bf16.vlgmr.msra.gmra.mrb[16].mxu1 %vm107_vm0, %v3147_v9 }
 0x12c   :  { %v1197_v15 = vpack.c.bf16 %v1180_v12, %v1178_v11  ;;  %943 = vmatprep.mubr.bf16.mxu1 %v3198_v2 }
 0x12d   :  { %v1169_v18 = vpop.f32.mrb[28].mxu0  ;;  %v1198_v19 = vpack.c.bf16 %v1181_v16, %v1179_v14  ;;  %v3151_v14 = vld [vmem:[%s4102_s4 + $0x40] sm:$0xff]  }
 0x12e   :  { %v1170_v20 = vadd.f32 %v1169_v18, %v1082_v17  ;;  %v1171_v21 = vpop.f32.mrb[29].mxu0 }
 0x12f   :  { %v1173_v23 = vpop.f32.mrb[30].mxu0  ;;  %v1172_v24 = vadd.f32 %v1171_v21, %v1082_v17  ;;  %1237 = vmatprep.subr.bf16.mxu1 %v1198_v19 }
 0x130   :  { %v1174_v25 = vadd.f32 %v1173_v23, %v1087_v22  ;;  %v1175_v27 = vpop.f32.mrb[31].mxu0  ;;  %1238 = vmatpush1.bf16.msra.mxu1 %v1197_v15  ;;  %v1182_v28 = vmax.f32 %v1170_v20, 0.0 }
 0x131   :  { %v1176_v30 = vadd.f32 %v1175_v27, %v1087_v22  ;;  %v1183_v31 = vmax.f32 %v1172_v24, 0.0  ;;  %v1754_v22 = vpop.permute.xlu0 %1753  ;;  %v1759_v27 = vpop.permute.xlu1 %1758 }
 0x132   :  { %v1184_v29 = vmax.f32 %v1174_v25, 0.0 }
 0x133   :  { %v1185_v33 = vmax.f32 %v1176_v30, 0.0  ;;  %2879 = vmatmul.mubr.msk.bf16.gmra.mrb[20].mxu1 %vm107_vm0, %v3148_v26 }
 0x134   :  { %v1199_v32 = vpack.c.bf16 %v1184_v29, %v1182_v28  ;;  %1269 = vmatprep.mubr.bf16.mxu1 %v3198_v2 }
 0x135   :  { %v1495_v35 = vpop.f32.mrb[32].mxu0  ;;  %v1200_v36 = vpack.c.bf16 %v1185_v33, %v1183_v31  ;;  %v3152_v31 = vld [vmem:[%s4102_s4 + $0x48] sm:$0xff]  }
 0x136   :  { %v1496_v37 = vadd.f32 %v1495_v35, %v1408_v34  ;;  %v1497_v38 = vpop.f32.mrb[33].mxu0 }
 0x137   :  { %v1499_v40 = vpop.f32.mrb[34].mxu0  ;;  %v1498_v41 = vadd.f32 %v1497_v38, %v1408_v34  ;;  %1239 = vmatprep.subr.bf16.mxu1 %v1200_v36 }
 0x138   :  { %v1500_v42 = vadd.f32 %v1499_v40, %v1413_v39  ;;  %1240 = vmatpush1.bf16.msra.mxu1 %v1199_v32  ;;  %v1501_v44 = vpop.f32.mrb[35].mxu0  ;;  %v1514_v45 = vmax.f32 %v1496_v37, 0.0 }
 0x139   :  { %v1502_v47 = vadd.f32 %v1501_v44, %v1413_v39  ;;  %v1515_v48 = vmax.f32 %v1498_v41, 0.0  ;;  %v2080_v39 = vpop.permute.xlu0 %2079  ;;  %v2085_v44 = vpop.permute.xlu1 %2084 }
 0x13a   :  { %v1516_v46 = vmax.f32 %v1500_v42, 0.0 }
 0x13b   :  { %v1517_v50 = vmax.f32 %v1502_v47, 0.0  ;;  %2914 = vmatmul.mubr.msk.bf16.vlgmr.msra.gmra.mrb[24].mxu1 %vm107_vm0, %v3149_v43 }
 0x13c   :  { %v1533_v49 = vpack.c.bf16 %v1516_v46, %v1514_v45  ;;  %1279 = vmatprep.mubr.bf16.mxu1 %v3198_v2 }
 0x13d   :  { %v1505_v52 = vpop.f32.mrb[36].mxu0  ;;  %v1534_v53 = vpack.c.bf16 %v1517_v50, %v1515_v48  ;;  %v3153_v48 = vld [vmem:[%s4102_s4 + $0x50] sm:$0xff]  }
 0x13e   :  { %v1506_v54 = vadd.f32 %v1505_v52, %v1418_v51  ;;  %v1507_v55 = vpop.f32.mrb[37].mxu0 }
 0x13f   :  { %v1509_v57 = vpop.f32.mrb[38].mxu0  ;;  %v1508_v58 = vadd.f32 %v1507_v55, %v1418_v51  ;;  %1573 = vmatprep.subr.bf16.mxu1 %v1534_v53 }
 0x140   :  { %v1510_v59 = vadd.f32 %v1509_v57, %v1423_v56  ;;  %v1511_v61 = vpop.f32.mrb[39].mxu0  ;;  %1574 = vmatpush1.bf16.msra.mxu1 %v1533_v49  ;;  %v1518_v62 = vmax.f32 %v1506_v54, 0.0 }
 0x141   :  { %v1512_v0 = vadd.f32 %v1511_v61, %v1423_v56  ;;  %v1519_v1 = vmax.f32 %v1508_v58, 0.0  ;;  %v2090_v56 = vpop.permute.xlu0 %2089  ;;  %v2095_v61 = vpop.permute.xlu1 %2094 }
 0x142   :  { %v1520_v63 = vmax.f32 %v1510_v59, 0.0 }
 0x143   :  { %v1521_v4 = vmax.f32 %v1512_v0, 0.0  ;;  %2915 = vmatmul.mubr.msk.bf16.gmra.mrb[28].mxu1 %vm107_vm0, %v3150_v60 }
 0x144   :  { %v1535_v3 = vpack.c.bf16 %v1520_v63, %v1518_v62  ;;  %1605 = vmatprep.mubr.bf16.mxu1 %v3198_v2 }
 0x145   :  { %v1831_v6 = vpop.f32.mrb[40].mxu0  ;;  %v1536_v7 = vpack.c.bf16 %v1521_v4, %v1519_v1 }
 0x146   :  { %v1832_v8 = vadd.f32 %v1831_v6, %v1744_v5  ;;  %v1833_v9 = vpop.f32.mrb[41].mxu0 }
 0x147   :  { %v1835_v11 = vpop.f32.mrb[42].mxu0  ;;  %v1834_v12 = vadd.f32 %v1833_v9, %v1744_v5  ;;  %1575 = vmatprep.subr.bf16.mxu1 %v1536_v7 }
 0x148   :  { %v1836_v13 = vadd.f32 %v1835_v11, %v1749_v10  ;;  %1576 = vmatpush1.bf16.msra.mxu1 %v1535_v3  ;;  %v1837_v15 = vpop.f32.mrb[43].mxu0  ;;  %v1850_v16 = vmax.f32 %v1832_v8, 0.0  ;;  %v3154_v3 = vld [vmem:[%s4102_s4 + $0x58] sm:$0xff]  }
 0x149   :  { %v1838_v18 = vadd.f32 %v1837_v15, %v1749_v10  ;;  %v1851_v19 = vmax.f32 %v1834_v12, 0.0  ;;  %v2416_v10 = vpop.permute.xlu0 %2415  ;;  %v2421_v15 = vpop.permute.xlu1 %2420 }
 0x14a   :  { %v1852_v17 = vmax.f32 %v1836_v13, 0.0 }
 0x14b   :  { %v1853_v21 = vmax.f32 %v1838_v18, 0.0  ;;  %2950 = vmatmul.mubr.msk.bf16.vlgmr.msra.gmra.mrb[32].mxu1 %vm107_vm0, %v3151_v14 }
 0x14c   :  { %v1869_v20 = vpack.c.bf16 %v1852_v17, %v1850_v16  ;;  %1615 = vmatprep.mubr.bf16.mxu1 %v3198_v2 }
 0x14d   :  { %v1841_v23 = vpop.f32.mrb[44].mxu0  ;;  %v1870_v24 = vpack.c.bf16 %v1853_v21, %v1851_v19 }
 0x14e   :  { %v1842_v25 = vadd.f32 %v1841_v23, %v1754_v22  ;;  %v1843_v26 = vpop.f32.mrb[45].mxu0 }
 0x14f   :  { %v1845_v28 = vpop.f32.mrb[46].mxu0  ;;  %v1844_v29 = vadd.f32 %v1843_v26, %v1754_v22  ;;  %1909 = vmatprep.subr.bf16.mxu1 %v1870_v24 }
 0x150   :  { %v1846_v30 = vadd.f32 %v1845_v28, %v1759_v27  ;;  %v1847_v32 = vpop.f32.mrb[47].mxu0  ;;  %1910 = vmatpush1.bf16.msra.mxu1 %v1869_v20  ;;  %v1854_v33 = vmax.f32 %v1842_v25, 0.0  ;;  %v3155_v20 = vld [vmem:[%s4102_s4 + $0x60] sm:$0xff]  }
 0x151   :  { %v1848_v35 = vadd.f32 %v1847_v32, %v1759_v27  ;;  %v1855_v36 = vmax.f32 %v1844_v29, 0.0  ;;  %v2426_v27 = vpop.permute.xlu0 %2425  ;;  %v2431_v32 = vpop.permute.xlu1 %2430 }
 0x152   :  { %v1856_v34 = vmax.f32 %v1846_v30, 0.0 }
 0x153   :  { %v1857_v38 = vmax.f32 %v1848_v35, 0.0  ;;  %2951 = vmatmul.mubr.msk.bf16.gmra.mrb[36].mxu1 %vm107_vm0, %v3152_v31 }
 0x154   :  { %v1871_v37 = vpack.c.bf16 %v1856_v34, %v1854_v33  ;;  %1941 = vmatprep.mubr.bf16.mxu1 %v3198_v2 }
 0x155   :  { %v2167_v40 = vpop.f32.mrb[48].mxu0  ;;  %v1872_v41 = vpack.c.bf16 %v1857_v38, %v1855_v36 }
 0x156   :  { %v2168_v42 = vadd.f32 %v2167_v40, %v2080_v39  ;;  %v2169_v43 = vpop.f32.mrb[49].mxu0 }
 0x157   :  { %v2171_v45 = vpop.f32.mrb[50].mxu0  ;;  %v2170_v46 = vadd.f32 %v2169_v43, %v2080_v39  ;;  %1911 = vmatprep.subr.bf16.mxu1 %v1872_v41 }
 0x158   :  { %v2172_v47 = vadd.f32 %v2171_v45, %v2085_v44  ;;  %1912 = vmatpush1.bf16.msra.mxu1 %v1871_v37  ;;  %v2173_v49 = vpop.f32.mrb[51].mxu0  ;;  %v2186_v50 = vmax.f32 %v2168_v42, 0.0  ;;  %v3156_v37 = vld [vmem:[%s4102_s4 + $0x68] sm:$0xff]   ;;  %v193_v45 = vpop.permute.xlu0 %192 }
 0x159   :  { %v2174_v52 = vadd.f32 %v2173_v49, %v2085_v44  ;;  %v2187_v53 = vmax.f32 %v2170_v46, 0.0  ;;  %v3157_v46 = vld [vmem:[%s4102_s4 + $0x70] sm:$0xff]   ;;  %v3158_v49 = vld [vmem:[%s4102_s4 + $0x78] sm:$0xff]   ;;  %s3200_s4 = smov [#allocation4]  }
 0x15a   :  { %v2188_v51 = vmax.f32 %v2172_v47, 0.0  ;;  %v198_v47 = vpop.permute.xlu1 %197  ;;  %s2733_s11 = sshll.u32 %s3200_s4, 4  ;;  %s2734_s11 = int_to_ptr.vmem [resolvable:$true] %s2733_s11 }
 0x15b   :  { %v2189_v55 = vmax.f32 %v2174_v52, 0.0  ;;  %2986 = vmatmul.mubr.msk.bf16.vlgmr.msra.gmra.mrb[40].mxu1 %vm107_vm0, %v3153_v48  ;;  %s3171_s13 = scalar_lea.vmem %s2734_s11, 256  ;;  %p3176_p6 = scmp.lt.s32.totalorder %s2734_s11, %s2734_s11 }
 0x15c   :  { %v2205_v54 = vpack.c.bf16 %v2188_v51, %v2186_v50  ;;  %1951 = vmatprep.mubr.bf16.mxu1 %v3198_v2  ;;  %v203_v48 = vpop.permute.xlu0 %202  ;;  %p3172_p5 = scmp.ne.s32.totalorder %s2734_s11, %s3171_s13  ;;  %p3177_p7 = scmp.lt.s32.totalorder %s3171_s13, %s3171_s13 }
 0x15d   :  { %v2177_v57 = vpop.f32.mrb[52].mxu0  ;;  %v2206_v58 = vpack.c.bf16 %v2189_v55, %v2187_v53 }
 0x15e   :  { %v2178_v59 = vadd.f32 %v2177_v57, %v2090_v56  ;;  %v2179_v60 = vpop.f32.mrb[53].mxu0  ;;  %v3800_v50 = vpop.permute.xlu1 %207  ;;  %p3178_p8 = por %p3177_p7, %p3176_p6 }
 0x15f   :  { %v2180_v62 = vadd.f32 %v2179_v60, %v2090_v56  ;;  %v2181_v63 = vpop.f32.mrb[54].mxu0  ;;  %2245 = vmatprep.subr.bf16.mxu1 %v2206_v58 }
 0x160   :  { %v2182_v0 = vadd.f32 %v2181_v63, %v2095_v61  ;;  %v2183_v1 = vpop.f32.mrb[55].mxu0  ;;  %2246 = vmatpush1.bf16.msra.mxu1 %v2205_v54  ;;  %v2190_v5 = vmax.f32 %v2178_v59, 0.0  ;;  %v297_v51 = vpop.permute.xlu0 %296  ;;  %p3179_p9 = pnand %p3178_p8, %p3172_p5 }
 0x161   :  { %v2184_v4 = vadd.f32 %v2183_v1, %v2095_v61  ;;  %v2191_v7 = vmax.f32 %v2180_v62, 0.0 }
 0x162   :  { %v2192_v6 = vmax.f32 %v2182_v0, 0.0  ;;  %v302_v52 = vpop.permute.xlu1 %301 }
 0x163   :  { %v2193_v8 = vmax.f32 %v2184_v4, 0.0  ;;  %2987 = vmatmul.mubr.msk.bf16.gmra.mrb[44].mxu1 %vm107_vm0, %v3154_v3 }
 0x164   :  { %v2207_v9 = vpack.c.bf16 %v2192_v6, %v2190_v5  ;;  %2277 = vmatprep.mubr.bf16.mxu1 %v3198_v2  ;;  %v3803_v53 = vpop.permute.xlu0 %306 }
 0x165   :  { %v2208_v11 = vpack.c.bf16 %v2193_v8, %v2191_v7  ;;  %v2503_v12 = vpop.f32.mrb[56].mxu0 }
 0x166   :  { %v2504_v13 = vadd.f32 %v2503_v12, %v2416_v10  ;;  %v2505_v14 = vpop.f32.mrb[57].mxu0  ;;  %v3805_v54 = vpop.permute.xlu1 %311 }
 0x167   :  { %v2506_v16 = vadd.f32 %v2505_v14, %v2416_v10  ;;  %2247 = vmatprep.subr.bf16.mxu1 %v2208_v11  ;;  %v2507_v17 = vpop.f32.mrb[58].mxu0 }
 0x168   :  { %v2508_v18 = vadd.f32 %v2507_v17, %v2421_v15  ;;  %2248 = vmatpush1.bf16.msra.mxu1 %v2207_v9  ;;  %v2509_v19 = vpop.f32.mrb[59].mxu0  ;;  %v2522_v22 = vmax.f32 %v2504_v13, 0.0  ;;  %v3807_v55 = vpop.permute.xlu0 %342 }
 0x169   :  { %v2510_v21 = vadd.f32 %v2509_v19, %v2421_v15  ;;  %v2523_v24 = vmax.f32 %v2506_v16, 0.0 }
 0x16a   :  { %v2524_v23 = vmax.f32 %v2508_v18, 0.0  ;;  %v3809_v56 = vpop.permute.xlu1 %531 }
 0x16b   :  { %v2525_v25 = vmax.f32 %v2510_v21, 0.0  ;;  %3022 = vmatmul.mubr.msk.bf16.vlgmr.msra.gmra.mrb[48].mxu1 %vm107_vm0, %v3155_v20 }
 0x16c   :  { %v2541_v26 = vpack.c.bf16 %v2524_v23, %v2522_v22  ;;  %2287 = vmatprep.mubr.bf16.mxu1 %v3198_v2  ;;  %v3811_v57 = vpop.permute.xlu0 %536 }
 0x16d   :  { %v2542_v28 = vpack.c.bf16 %v2525_v25, %v2523_v24  ;;  %v2513_v29 = vpop.f32.mrb[60].mxu0 }
 0x16e   :  { %v2514_v30 = vadd.f32 %v2513_v29, %v2426_v27  ;;  %v2515_v31 = vpop.f32.mrb[61].mxu0 }
 0x16f   :  { %v2516_v33 = vadd.f32 %v2515_v31, %v2426_v27  ;;  %v2517_v34 = vpop.f32.mrb[62].mxu0  ;;  %2581 = vmatprep.subr.bf16.mxu1 %v2542_v28 }
 0x170   :  { %v2518_v35 = vadd.f32 %v2517_v34, %v2431_v32  ;;  %v2519_v36 = vpop.f32.mrb[63].mxu0  ;;  %2582 = vmatpush1.bf16.msra.mxu1 %v2541_v26  ;;  %v2526_v39 = vmax.f32 %v2514_v30, 0.0  ;;  %v3815_v58 = vpop.permute.xlu0 %546 }
 0x171   :  { %v2520_v38 = vadd.f32 %v2519_v36, %v2431_v32  ;;  %v2527_v41 = vmax.f32 %v2516_v33, 0.0 }
 0x172   :  { %v2528_v40 = vmax.f32 %v2518_v35, 0.0 }
 0x173   :  { %v2529_v42 = vmax.f32 %v2520_v38, 0.0  ;;  %3023 = vmatmul.mubr.msk.bf16.gmra.mrb[52].mxu1 %vm107_vm0, %v3156_v37 }
 0x174   :  { %v2543_v43 = vpack.c.bf16 %v2528_v40, %v2526_v39  ;;  %2613 = vmatprep.mubr.bf16.mxu1 %v3198_v2  ;;  %v3819_v60 = vpop.permute.xlu0 %640 }
 0x175   :  { %v2544_v44 = vpack.c.bf16 %v2529_v42, %v2527_v41 }
 0x177   :  { %2583 = vmatprep.subr.bf16.mxu1 %v2544_v44 }
 0x178   :  { %2584 = vmatpush1.bf16.msra.mxu1 %v2543_v43  ;;  %v3823_v62 = vpop.permute.xlu0 %650 }
 0x17b   :  { %3058 = vmatmul.mubr.msk.bf16.vlgmr.msra.gmra.mrb[56].mxu1 %vm107_vm0, %v3157_v46 }
 0x17c   :  { %2623 = vmatprep.mubr.bf16.mxu1 %v3198_v2  ;;  %v3813_v2 = vpop.permute.xlu1 %541  ;;  %v3827_v0 = vpop.permute.xlu0 %867 }
 0x180   :  { %v3817_v59 = vpop.permute.xlu1 %635  ;;  %v3831_v3 = vpop.permute.xlu0 %877 }
 0x183   :  { %3059 = vmatmul.mubr.msk.bf16.gmra.mrb[60].mxu1 %vm107_vm0, %v3158_v49 }
 0x184   :  { %v3821_v61 = vpop.permute.xlu1 %645  ;;  %v3835_v5 = vpop.permute.xlu0 %971 }
 0x188   :  { %v3825_v63 = vpop.permute.xlu1 %681  ;;  %v3839_v7 = vpop.permute.xlu0 %981 }
 0x18c   :  { %v3829_v1 = vpop.permute.xlu1 %872  ;;  %v3843_v9 = vpop.permute.xlu0 %1017 }
 0x190   :  { %v3833_v4 = vpop.permute.xlu1 %882  ;;  %v3847_v11 = vpop.permute.xlu0 %1208 }
 0x194   :  { %v3837_v6 = vpop.permute.xlu1 %976  ;;  %v3851_v13 = vpop.permute.xlu0 %1218 }
 0x198   :  { %v3841_v8 = vpop.permute.xlu1 %986  ;;  %v3855_v15 = vpop.permute.xlu0 %1312 }
 0x19c   :  { %v3845_v10 = vpop.permute.xlu1 %1203  ;;  %v3859_v17 = vpop.permute.xlu0 %1322 }
 0x1a0   :  { %v3849_v12 = vpop.permute.xlu1 %1213  ;;  %v3863_v27 = vpop.permute.xlu0 %1539 }
 0x1a4   :  { %v3853_v14 = vpop.permute.xlu1 %1307  ;;  %v3867_v41 = vpop.permute.xlu0 %1549 }
 0x1a8   :  { %v3857_v16 = vpop.permute.xlu1 %1317 }
 0x1ac   :  { %v3861_v23 = vpop.permute.xlu1 %1353 }
 0x1b0   :  { %v3865_v37 = vpop.permute.xlu1 %1544 }
 0x1de   :  { %v260_v18 = vpop.f32.mrb[0].mxu1 }
 0x1df   :  { %v261_v19 = vadd.f32 %v260_v18, %v193_v45  ;;  %v262_v20 = vpop.f32.mrb[1].mxu1 }
 0x1e0   :  { %v263_v21 = vadd.f32 %v262_v20, %v193_v45  ;;  %v264_v22 = vpop.f32.mrb[2].mxu1 }
 0x1e1   :  { %v279_v24 = vmax.f32 %v261_v19, 0.0  ;;  %v265_v25 = vadd.f32 %v264_v22, %v198_v47  ;;  %v266_v26 = vpop.f32.mrb[3].mxu1 }
 0x1e2   :  { %v280_v28 = vmax.f32 %v263_v21, 0.0  ;;  %v267_v29 = vadd.f32 %v266_v26, %v198_v47  ;;  %v3873_v21 = vpop.permute.xlu1 %1554 }
 0x1e3   :  { %v281_v30 = vmax.f32 %v265_v25, 0.0  ;;  %v314_v32 = vmul.f32 %v297_v51, %v279_v24 }
 0x1e4   :  { %v282_v31 = vmax.f32 %v267_v29, 0.0  ;;  %v315_v34 = vmul.f32 %v297_v51, %v280_v28  ;;  %v345_v29 = vlaneseq }
 0x1e5   :  { %v316_v33 = vmul.f32 %v302_v52, %v281_v30 }
 0x1e6   :  { %v317_v35 = vmul.f32 %v302_v52, %v282_v31  ;;  %v270_v36 = vpop.f32.mrb[4].mxu1  ;;  %vm3920_vm1 = vcmp.lt.s32.totalorder %v345_v29, 256 }
 0x1e7   :  { %v322_v38 = vadd.f32 %v316_v33, %v314_v32  ;;  %v271_v39 = vadd.f32 %v270_v36, %v203_v48  ;;  %v272_v40 = vpop.f32.mrb[5].mxu1 }
 0x1e8   :  { %v331_v42 = vadd.f32 %v317_v35, %v315_v34  ;;  %v273_v43 = vadd.f32 %v272_v40, %v203_v48  ;;  %v274_v44 = vpop.f32.mrb[6].mxu1  ;;  %v3876_v48 = vpop.permute.xlu0 %1643 }
 0x1e9   :  { %v283_v45 = vmax.f32 %v271_v39, 0.0  ;;  %v275_v46 = vadd.f32 %v274_v44, %v3800_v50  ;;  %v276_v47 = vpop.f32.mrb[7].mxu1 }
 0x1ea   :  { %v284_v49 = vmax.f32 %v273_v43, 0.0  ;;  %v277_v18 = vadd.f32 %v276_v47, %v3800_v50  ;;  %v3884_v43 = vpop.permute.xlu1 %1648 }
 0x1eb   :  { %v318_v51 = vmul.f32 %v3803_v53, %v283_v45  ;;  %v285_v52 = vmax.f32 %v275_v46, 0.0 }
 0x1ec   :  { %v319_v19 = vmul.f32 %v3803_v53, %v284_v49  ;;  %v286_v20 = vmax.f32 %v277_v18, 0.0  ;;  %v3886_v46 = vpop.permute.xlu0 %1653 }
 0x1ed   :  { %v323_v22 = vadd.f32 %v322_v38, %v318_v51  ;;  %v320_v24 = vmul.f32 %v3805_v54, %v285_v52  ;;  %v3199_v52 = vmov 1966171168  }
 0x1ee   :  { %v332_v25 = vadd.f32 %v331_v42, %v319_v19  ;;  %v321_v26 = vmul.f32 %v3805_v54, %v286_v20  ;;  %v599_v28 = vpop.f32.mrb[8].mxu1  ;;  %v346_v54 = vshrl.u32 %v345_v29, 7  ;;  %v355_v19 = vunpack.c.l.s4 %v3199_v52 }
 0x1ef   :  { %v324_v30 = vadd.f32 %v323_v22, %v320_v24  ;;  %v600_v50 = vadd.f32 %v599_v28, %v3809_v56  ;;  %v601_v31 = vpop.f32.mrb[9].mxu1 }
 0x1f0   :  { %v333_v32 = vadd.f32 %v332_v25, %v321_v26  ;;  %v602_v53 = vadd.f32 %v601_v31, %v3809_v56  ;;  %v603_v33 = vpop.f32.mrb[10].mxu1  ;;  %v3892_v25 = vsub.s32 0, %v346_v54 }
 0x1f1   :  { %v325_v34 = vrot.slane %v324_v30, 4  ;;  %v618_v35 = vmax.f32 %v600_v50, 0.0  ;;  %v604_v36 = vadd.f32 %v603_v33, %v3811_v57  ;;  %v605_v38 = vpop.f32.mrb[11].mxu1 }
 0x1f2   :  { %v334_v39 = vrot.slane %v333_v32, 4  ;;  %v619_v40 = vmax.f32 %v602_v53, 0.0  ;;  %v606_v42 = vadd.f32 %v605_v38, %v3811_v57  ;;  %v356_v38 = vunpack.c.0.s8 %v355_v19 }
 0x1f3   :  { %v326_v44 = vadd.f32 %v325_v34, %v324_v30  ;;  %v620_v45 = vmax.f32 %v604_v36, 0.0  ;;  %v653_v18 = vmul.f32 %v3817_v59, %v618_v35  ;;  %v3896_v34 = vpop.permute.xlu1 %1658 }
 0x1f4   :  { %v335_v47 = vadd.f32 %v334_v39, %v333_v32  ;;  %v621_v56 = vmax.f32 %v606_v42, 0.0  ;;  %v654_v57 = vmul.f32 %v3817_v59, %v619_v40  ;;  %v3899_v39 = vpop.permute.xlu0 %1689 }
 0x1f5   :  { %v327_v49 = vrot.slane %v326_v44, 2  ;;  %v655_v51 = vmul.f32 %v3819_v60, %v620_v45  ;;  %v348_v45 = vrot.slane %v3807_v55, %v3892_v25 }
 0x1f6   :  { %v336_v20 = vrot.slane %v335_v47, 2  ;;  %v656_v22 = vmul.f32 %v3819_v60, %v621_v56  ;;  %v609_v24 = vpop.f32.mrb[12].mxu1 }
 0x1f7   :  { %v328_v26 = vadd.f32 %v327_v49, %v326_v44  ;;  %v661_v28 = vadd.f32 %v655_v51, %v653_v18  ;;  %v610_v30 = vadd.f32 %v609_v24, %v3813_v2  ;;  %v611_v50 = vpop.f32.mrb[13].mxu1  ;;  %v3910_v55 = vpop.permute.xlu1 %1875 }
 0x1f8   :  { %v337_v31 = vadd.f32 %v336_v20, %v335_v47  ;;  %v670_v32 = vadd.f32 %v656_v22, %v654_v57  ;;  %v612_v53 = vadd.f32 %v611_v50, %v3813_v2  ;;  %v613_v33 = vpop.f32.mrb[14].mxu1  ;;  %v3907_v57 = vsub.s32 %v356_v38, %v346_v54 }
 0x1f9   :  { %v329_v35 = vrot.slane %v328_v26, 1  ;;  %v622_v36 = vmax.f32 %v610_v30, 0.0  ;;  %v614_v59 = vadd.f32 %v613_v33, %v3815_v58  ;;  %v615_v60 = vpop.f32.mrb[15].mxu1 }
 0x1fa   :  { %v338_v40 = vrot.slane %v337_v31, 1  ;;  %v623_v42 = vmax.f32 %v612_v53, 0.0  ;;  %v616_v44 = vadd.f32 %v615_v60, %v3815_v58  ;;  %v3913_v53 = vpop.permute.xlu0 %1880 }
 0x1fb   :  { %v330_v47 = vadd.f32 %v329_v35, %v328_v26  ;;  %v657_v2 = vmul.f32 %v3821_v61, %v622_v36  ;;  %v624_v56 = vmax.f32 %v614_v59, 0.0 }
 0x1fc   :  { %v339_v49 = vadd.f32 %v338_v40, %v337_v31  ;;  %v658_v18 = vmul.f32 %v3821_v61, %v623_v42  ;;  %v625_v51 = vmax.f32 %v616_v44, 0.0 }
 0x1fd   :  { %v349_v52 = vadd.f32 %v348_v45, %v330_v47  ;;  %v662_v20 = vadd.f32 %v661_v28, %v657_v2  ;;  %v659_v19 = vmul.f32 %v3823_v62, %v624_v56  ;;  %v3925_v56 = vpop.permute.xlu1 %1885 }
 0x1fe   :  { %v350_v22 = vadd.f32 %v348_v45, %v339_v49  ;;  %v671_v24 = vadd.f32 %v670_v32, %v658_v18  ;;  %v660_v58 = vmul.f32 %v3823_v62, %v625_v51  ;;  %v935_v30 = vpop.f32.mrb[16].mxu1 }
 0x1ff   :  { %v663_v26 = vadd.f32 %v662_v20, %v659_v19  ;;  %v936_v50 = vadd.f32 %v935_v30, %v3827_v0  ;;  %v937_v31 = vpop.f32.mrb[17].mxu1 }
 0x200   :  { %v353_v61 = vcombine.low %v349_v52, %v350_v22  ;;  %v672_v33 = vadd.f32 %v671_v24, %v660_v58  ;;  %v938_v28 = vadd.f32 %v937_v31, %v3827_v0  ;;  %v939_v35 = vpop.f32.mrb[18].mxu1  ;;  %v3929_v52 = vpop.permute.xlu0 %2211 }
 0x201   :  { %v664_v54 = vrot.slane %v663_v26, 4  ;;  %v954_v36 = vmax.f32 %v936_v50, 0.0  ;;  %v940_v32 = vadd.f32 %v939_v35, %v3829_v1  ;;  %v941_v59 = vpop.f32.mrb[19].mxu1 }
 0x202   :  { %v360_v62 = vrot.slane %v353_v61, %v3907_v57  ;;  %v673_v60 = vrot.slane %v672_v33, 4  ;;  %v955_v38 = vmax.f32 %v938_v28, 0.0  ;;  %v942_v40 = vadd.f32 %v941_v59, %v3829_v1  ;;  %v3941_v59 = vpop.permute.xlu1 %2216 }
 0x203   :  { %v665_v44 = vadd.f32 %v664_v54, %v663_v26  ;;  %v956_v45 = vmax.f32 %v940_v32, 0.0  ;;  %v989_v18 = vmul.f32 %v3835_v5, %v954_v36  ;;  %v687_v32 = vrot.slane %v3825_v63, %v3892_v25 }
 0x204   :  { %v367_v0 = vrot.slane %v360_v62, %v3907_v57  ;;  %v674_v47 = vadd.f32 %v673_v60, %v672_v33  ;;  %v957_v2 = vmax.f32 %v942_v40, 0.0  ;;  %v990_v29 = vmul.f32 %v3835_v5, %v955_v38 }
 0x205   :  { %v666_v49 = vrot.slane %v665_v44, 2  ;;  %v991_v51 = vmul.f32 %v3837_v6, %v956_v45 }
 0x206   :  { %373 = vst.msk [vmem:[#allocation4] ss:$8 sm:$0x3] %vm3920_vm1, %v367_v0  ;;  %v675_v1 = vrot.slane %v674_v47, 2  ;;  %v992_v20 = vmul.f32 %v3837_v6, %v957_v2  ;;  %v945_v19 = vpop.f32.mrb[20].mxu1 }
 0x207   :  { %v667_v22 = vadd.f32 %v666_v49, %v665_v44  ;;  %v997_v24 = vadd.f32 %v991_v51, %v989_v18  ;;  %v946_v58 = vadd.f32 %v945_v19, %v3831_v3  ;;  %v947_v30 = vpop.f32.mrb[21].mxu1 }
 0x208   :  { %v676_v26 = vadd.f32 %v675_v1, %v674_v47  ;;  %v1006_v50 = vadd.f32 %v992_v20, %v990_v29  ;;  %v948_v31 = vadd.f32 %v947_v30, %v3831_v3  ;;  %v949_v61 = vpop.f32.mrb[22].mxu1  ;;  %v3944_v3 = vpop.permute.xlu0 %2547 }
 0x209   :  { %v668_v33 = vrot.slane %v667_v22, 1  ;;  %v958_v28 = vmax.f32 %v946_v58, 0.0  ;;  %v950_v35 = vadd.f32 %v949_v61, %v3833_v4  ;;  %v951_v54 = vpop.f32.mrb[23].mxu1 }
 0x20a   :  { %v677_v36 = vrot.slane %v676_v26, 1  ;;  %v959_v5 = vmax.f32 %v948_v31, 0.0  ;;  %v952_v6 = vadd.f32 %v951_v54, %v3833_v4 }
 0x20b   :  { %v669_v62 = vadd.f32 %v668_v33, %v667_v22  ;;  %v993_v60 = vmul.f32 %v3839_v7, %v958_v28  ;;  %v960_v38 = vmax.f32 %v950_v35, 0.0 }
 0x20c   :  { %v678_v40 = vadd.f32 %v677_v36, %v676_v26  ;;  %v994_v44 = vmul.f32 %v3839_v7, %v959_v5  ;;  %v961_v45 = vmax.f32 %v952_v6, 0.0  ;;  %v3951_v7 = vpop.permute.xlu1 %2552 }
 0x20d   :  { %v688_v0 = vadd.f32 %v687_v32, %v669_v62  ;;  %v998_v47 = vadd.f32 %v997_v24, %v993_v60  ;;  %v995_v2 = vmul.f32 %v3841_v8, %v960_v38 }
 0x20e   :  { %v689_v4 = vadd.f32 %v687_v32, %v678_v40  ;;  %v1007_v49 = vadd.f32 %v1006_v50, %v994_v44  ;;  %v996_v63 = vmul.f32 %v3841_v8, %v961_v45  ;;  %v1271_v18 = vpop.f32.mrb[24].mxu1  ;;  %v3954_v50 = vpop.permute.xlu0 %2221 }
 0x20f   :  { %v999_v51 = vadd.f32 %v998_v47, %v995_v2  ;;  %v1272_v1 = vadd.f32 %v1271_v18, %v3845_v10  ;;  %v1273_v29 = vpop.f32.mrb[25].mxu1 }
 0x210   :  { %v692_v20 = vcombine.low %v688_v0, %v689_v4  ;;  %v1008_v19 = vadd.f32 %v1007_v49, %v996_v63  ;;  %v1274_v22 = vadd.f32 %v1273_v29, %v3845_v10  ;;  %v1275_v58 = vpop.f32.mrb[26].mxu1  ;;  %v3965_v44 = vpop.permute.xlu1 %2557 }
 0x211   :  { %v1000_v30 = vrot.slane %v999_v51, 4  ;;  %v1290_v24 = vmax.f32 %v1272_v1, 0.0  ;;  %v1276_v26 = vadd.f32 %v1275_v58, %v3847_v11  ;;  %v1277_v31 = vpop.f32.mrb[27].mxu1  ;;  %v1023_v58 = vrot.slane %v3843_v9, %v3892_v25 }
 0x212   :  { %v699_v8 = vrot.slane %v692_v20, %v3907_v57  ;;  %v1009_v61 = vrot.slane %v1008_v19, 4  ;;  %v1291_v33 = vmax.f32 %v1274_v22, 0.0  ;;  %v1278_v28 = vadd.f32 %v1277_v31, %v3847_v11  ;;  %v3968_v4 = vpop.permute.xlu0 %1890 }
 0x213   :  { %v1001_v35 = vadd.f32 %v1000_v30, %v999_v51  ;;  %v1292_v54 = vmax.f32 %v1276_v26, 0.0  ;;  %v1325_v32 = vmul.f32 %v3853_v14, %v1290_v24 }
 0x214   :  { %v706_v10 = vrot.slane %v699_v8, %v3907_v57  ;;  %v1010_v36 = vadd.f32 %v1009_v61, %v1008_v19  ;;  %v1293_v5 = vmax.f32 %v1278_v28, 0.0  ;;  %v1326_v38 = vmul.f32 %v3853_v14, %v1291_v33  ;;  %v3977_v61 = vpop.permute.xlu1 %1979 }
 0x215   :  { %v1002_v6 = vrot.slane %v1001_v35, 2  ;;  %v1327_v62 = vmul.f32 %v3855_v15, %v1292_v54 }
 0x216   :  { %709 = vst.msk [vmem:[#allocation4 + $0x1] ss:$8 sm:$0x3] %vm3920_vm1, %v706_v10  ;;  %v1011_v60 = vrot.slane %v1010_v36, 2  ;;  %v1328_v40 = vmul.f32 %v3855_v15, %v1293_v5  ;;  %v1281_v11 = vpop.f32.mrb[28].mxu1  ;;  %v3980_v54 = vpop.permute.xlu0 %1984 }
 0x217   :  { %v1003_v45 = vadd.f32 %v1002_v6, %v1001_v35  ;;  %v1333_v0 = vadd.f32 %v1327_v62, %v1325_v32  ;;  %v1282_v47 = vadd.f32 %v1281_v11, %v3849_v12  ;;  %v1283_v2 = vpop.f32.mrb[29].mxu1 }
 0x218   :  { %v1012_v49 = vadd.f32 %v1011_v60, %v1010_v36  ;;  %v1342_v63 = vadd.f32 %v1328_v40, %v1326_v38  ;;  %v1284_v18 = vadd.f32 %v1283_v2, %v3849_v12  ;;  %v1285_v51 = vpop.f32.mrb[30].mxu1 }
 0x219   :  { %v1004_v1 = vrot.slane %v1003_v45, 1  ;;  %v1294_v29 = vmax.f32 %v1282_v47, 0.0  ;;  %v1286_v14 = vadd.f32 %v1285_v51, %v3851_v13  ;;  %v1287_v15 = vpop.f32.mrb[31].mxu1 }
 0x21a   :  { %v1013_v20 = vrot.slane %v1012_v49, 1  ;;  %v1295_v19 = vmax.f32 %v1284_v18, 0.0  ;;  %v1288_v22 = vadd.f32 %v1287_v15, %v3851_v13 }
 0x21b   :  { %v1005_v30 = vadd.f32 %v1004_v1, %v1003_v45  ;;  %v1329_v24 = vmul.f32 %v3857_v16, %v1294_v29  ;;  %v1296_v26 = vmax.f32 %v1286_v14, 0.0  ;;  %v3990_v1 = vpop.permute.xlu0 %2315 }
 0x21c   :  { %v1014_v31 = vadd.f32 %v1013_v20, %v1012_v49  ;;  %v1330_v12 = vmul.f32 %v3857_v16, %v1295_v19  ;;  %v1297_v8 = vmax.f32 %v1288_v22, 0.0 }
 0x21d   :  { %v1024_v33 = vadd.f32 %v1023_v58, %v1005_v30  ;;  %v1334_v28 = vadd.f32 %v1333_v0, %v1329_v24  ;;  %v1331_v35 = vmul.f32 %v3859_v17, %v1296_v26 }
 0x21e   :  { %v1025_v13 = vadd.f32 %v1023_v58, %v1014_v31  ;;  %v1343_v10 = vadd.f32 %v1342_v63, %v1330_v12  ;;  %v1332_v9 = vmul.f32 %v3859_v17, %v1297_v8  ;;  %v1607_v36 = vpop.f32.mrb[32].mxu1  ;;  %v3988_v63 = vpop.permute.xlu1 %2226 }
 0x21f   :  { %v1335_v5 = vadd.f32 %v1334_v28, %v1331_v35  ;;  %v1608_v6 = vadd.f32 %v1607_v36, %v3863_v27  ;;  %v1609_v32 = vpop.f32.mrb[33].mxu1 }
 0x220   :  { %v1028_v62 = vcombine.low %v1024_v33, %v1025_v13  ;;  %v1344_v16 = vadd.f32 %v1343_v10, %v1332_v9  ;;  %v1610_v60 = vadd.f32 %v1609_v32, %v3863_v27  ;;  %v1611_v38 = vpop.f32.mrb[34].mxu1 }
 0x221   :  { %v1336_v40 = vrot.slane %v1335_v5, 4  ;;  %v1626_v11 = vmax.f32 %v1608_v6, 0.0  ;;  %v1612_v45 = vadd.f32 %v1611_v38, %v3865_v37  ;;  %v1613_v0 = vpop.f32.mrb[35].mxu1 }
 0x222   :  { %v1035_v47 = vrot.slane %v1028_v62, %v3907_v57  ;;  %v1345_v2 = vrot.slane %v1344_v16, 4  ;;  %v1627_v49 = vmax.f32 %v1610_v60, 0.0  ;;  %v1614_v17 = vadd.f32 %v1613_v0, %v3865_v37  ;;  %v4001_v13 = vpop.permute.xlu1 %2320 }
 0x223   :  { %v1337_v18 = vadd.f32 %v1336_v40, %v1335_v5  ;;  %v1628_v51 = vmax.f32 %v1612_v45, 0.0  ;;  %v1661_v20 = vmul.f32 %v3876_v48, %v1626_v11  ;;  %v4004_v5 = vpop.permute.xlu0 %2562  ;;  %v1359_v62 = vrot.slane %v3861_v23, %v3892_v25 }
 0x224   :  { %v1042_v27 = vrot.slane %v1035_v47, %v3907_v57  ;;  %v1346_v29 = vadd.f32 %v1345_v2, %v1344_v16  ;;  %v1629_v14 = vmax.f32 %v1614_v17, 0.0  ;;  %v1662_v37 = vmul.f32 %v3876_v48, %v1627_v49 }
 0x225   :  { %v1338_v15 = vrot.slane %v1337_v18, 2  ;;  %v1663_v19 = vmul.f32 %v3884_v43, %v1628_v51 }
 0x226   :  { %1045 = vst.msk [vmem:[#allocation4 + $0x2] ss:$8 sm:$0x3] %vm3920_vm1, %v1042_v27  ;;  %v1347_v22 = vrot.slane %v1346_v29, 2  ;;  %v1664_v58 = vmul.f32 %v3884_v43, %v1629_v14  ;;  %v1617_v30 = vpop.f32.mrb[36].mxu1 }
 0x227   :  { %v1339_v24 = vadd.f32 %v1338_v15, %v1337_v18  ;;  %v1669_v26 = vadd.f32 %v1663_v19, %v1661_v20  ;;  %v1618_v31 = vadd.f32 %v1617_v30, %v3867_v41  ;;  %v1619_v12 = vpop.f32.mrb[37].mxu1  ;;  %v4013_v18 = vpop.permute.xlu1 %2651 }
 0x228   :  { %v1348_v8 = vadd.f32 %v1347_v22, %v1346_v29  ;;  %v1678_v33 = vadd.f32 %v1664_v58, %v1662_v37  ;;  %v1620_v28 = vadd.f32 %v1619_v12, %v3867_v41  ;;  %v1621_v35 = vpop.f32.mrb[38].mxu1  ;;  %v4016_v29 = vpop.permute.xlu0 %2656 }
 0x229   :  { %v1340_v10 = vrot.slane %v1339_v24, 1  ;;  %v1630_v9 = vmax.f32 %v1618_v31, 0.0  ;;  %v1622_v36 = vadd.f32 %v1621_v35, %v3873_v21  ;;  %v1623_v48 = vpop.f32.mrb[39].mxu1 }
 0x22a   :  { %v1349_v43 = vrot.slane %v1348_v8, 1  ;;  %v1631_v6 = vmax.f32 %v1620_v28, 0.0  ;;  %v1624_v32 = vadd.f32 %v1623_v48, %v3873_v21 }
 0x22b   :  { %v1341_v16 = vadd.f32 %v1340_v10, %v1339_v24  ;;  %v1665_v41 = vmul.f32 %v3886_v46, %v1630_v9  ;;  %v1632_v60 = vmax.f32 %v1622_v36, 0.0  ;;  %v1990_v35 = vpop.permute.xlu1 %1989 }
 0x22c   :  { %v1350_v38 = vadd.f32 %v1349_v43, %v1348_v8  ;;  %v1666_v40 = vmul.f32 %v3886_v46, %v1631_v6  ;;  %v1633_v11 = vmax.f32 %v1624_v32, 0.0  ;;  %v4025_v36 = vpop.permute.xlu0 %2325 }
 0x22d   :  { %v1360_v45 = vadd.f32 %v1359_v62, %v1341_v16  ;;  %v1670_v0 = vadd.f32 %v1669_v26, %v1665_v41  ;;  %v1667_v47 = vmul.f32 %v3896_v34, %v1632_v60 }
 0x22e   :  { %v1361_v2 = vadd.f32 %v1359_v62, %v1350_v38  ;;  %v1679_v49 = vadd.f32 %v1678_v33, %v1666_v40  ;;  %v1668_v17 = vmul.f32 %v3896_v34, %v1633_v11  ;;  %v1943_v21 = vpop.f32.mrb[40].mxu1 }
 0x22f   :  { %v1671_v23 = vadd.f32 %v1670_v0, %v1667_v47  ;;  %v1944_v51 = vadd.f32 %v1943_v21, %v3910_v55  ;;  %v1945_v27 = vpop.f32.mrb[41].mxu1 }
 0x230   :  { %v1364_v14 = vcombine.low %v1360_v45, %v1361_v2  ;;  %v1680_v46 = vadd.f32 %v1679_v49, %v1668_v17  ;;  %v1946_v15 = vadd.f32 %v1945_v27, %v3910_v55  ;;  %v1947_v20 = vpop.f32.mrb[42].mxu1  ;;  %v1695_v17 = vrot.slane %v3899_v39, %v3892_v25  ;;  %v4037_v27 = vpop.permute.xlu1 %2661 }
 0x231   :  { %v1672_v19 = vrot.slane %v1671_v23, 4  ;;  %v1962_v22 = vmax.f32 %v1944_v51, 0.0  ;;  %v1948_v37 = vadd.f32 %v1947_v20, %v3913_v53  ;;  %v1949_v58 = vpop.f32.mrb[43].mxu1 }
 0x232   :  { %v1371_v34 = vrot.slane %v1364_v14, %v3907_v57  ;;  %v1681_v30 = vrot.slane %v1680_v46, 4  ;;  %v1963_v24 = vmax.f32 %v1946_v15, 0.0  ;;  %v1950_v26 = vadd.f32 %v1949_v58, %v3913_v53  ;;  %v1995_v14 = vpop.permute.xlu0 %1994 }
 0x233   :  { %v1673_v31 = vadd.f32 %v1672_v19, %v1671_v23  ;;  %v1964_v12 = vmax.f32 %v1948_v37, 0.0  ;;  %v1997_v10 = vmul.f32 %v3977_v61, %v1962_v22 }
 0x234   :  { %v1378_v8 = vrot.slane %v1371_v34, %v3907_v57  ;;  %v1682_v33 = vadd.f32 %v1681_v30, %v1680_v46  ;;  %v1965_v28 = vmax.f32 %v1950_v26, 0.0  ;;  %v1998_v53 = vmul.f32 %v3977_v61, %v1963_v24 }
 0x235   :  { %v1674_v55 = vrot.slane %v1673_v31, 2  ;;  %v1999_v9 = vmul.f32 %v3980_v54, %v1964_v12 }
 0x236   :  { %1381 = vst.msk [vmem:[#allocation4 + $0x3] ss:$8 sm:$0x3] %vm3920_vm1, %v1378_v8  ;;  %v1683_v48 = vrot.slane %v1682_v33, 2  ;;  %v2000_v43 = vmul.f32 %v3980_v54, %v1965_v28  ;;  %v1953_v6 = vpop.f32.mrb[44].mxu1 }
 0x237   :  { %v1675_v32 = vadd.f32 %v1674_v55, %v1673_v31  ;;  %v2005_v62 = vadd.f32 %v1999_v9, %v1997_v10  ;;  %v1954_v16 = vadd.f32 %v1953_v6, %v3925_v56  ;;  %v1955_v41 = vpop.f32.mrb[45].mxu1  ;;  %v2331_v10 = vpop.permute.xlu1 %2330 }
 0x238   :  { %v1684_v60 = vadd.f32 %v1683_v48, %v1682_v33  ;;  %v2014_v38 = vadd.f32 %v2000_v43, %v1998_v53  ;;  %v1956_v40 = vadd.f32 %v1955_v41, %v3925_v56  ;;  %v1957_v11 = vpop.f32.mrb[46].mxu1 }
 0x239   :  { %v1676_v45 = vrot.slane %v1675_v32, 1  ;;  %v1966_v0 = vmax.f32 %v1954_v16, 0.0  ;;  %v1958_v47 = vadd.f32 %v1957_v11, %v3968_v4  ;;  %v1959_v2 = vpop.f32.mrb[47].mxu1 }
 0x23a   :  { %v1685_v49 = vrot.slane %v1684_v60, 1  ;;  %v1967_v61 = vmax.f32 %v1956_v40, 0.0  ;;  %v1960_v54 = vadd.f32 %v1959_v2, %v3968_v4 }
 0x23b   :  { %v1677_v21 = vadd.f32 %v1676_v45, %v1675_v32  ;;  %v2001_v23 = vmul.f32 %v1990_v35, %v1966_v0  ;;  %v1968_v51 = vmax.f32 %v1958_v47, 0.0 }
 0x23c   :  { %v1686_v56 = vadd.f32 %v1685_v49, %v1684_v60  ;;  %v2002_v46 = vmul.f32 %v1990_v35, %v1967_v61  ;;  %v1969_v15 = vmax.f32 %v1960_v54, 0.0  ;;  %v2026_v61 = vpop.permute.xlu1 %2025 }
 0x23d   :  { %v1696_v20 = vadd.f32 %v1695_v17, %v1677_v21  ;;  %v2006_v19 = vadd.f32 %v2005_v62, %v2001_v23  ;;  %v2003_v22 = vmul.f32 %v1995_v14, %v1968_v51 }
 0x23e   :  { %v1697_v37 = vadd.f32 %v1695_v17, %v1686_v56  ;;  %v2015_v58 = vadd.f32 %v2014_v38, %v2002_v46  ;;  %v2004_v34 = vmul.f32 %v1995_v14, %v1969_v15  ;;  %v2279_v30 = vpop.f32.mrb[48].mxu1 }
 0x23f   :  { %v2007_v4 = vadd.f32 %v2006_v19, %v2003_v22  ;;  %v2280_v24 = vadd.f32 %v2279_v30, %v3929_v52  ;;  %v2281_v39 = vpop.f32.mrb[49].mxu1 }
 0x240   :  { %v1700_v26 = vcombine.low %v1696_v20, %v1697_v37  ;;  %v2016_v31 = vadd.f32 %v2015_v58, %v2004_v34  ;;  %v2282_v12 = vadd.f32 %v2281_v39, %v3929_v52  ;;  %v2283_v8 = vpop.f32.mrb[50].mxu1  ;;  %v2031_v20 = vrot.slane %v2026_v61, %v3892_v25 }
 0x241   :  { %v2008_v33 = vrot.slane %v2007_v4, 4  ;;  %v2298_v28 = vmax.f32 %v2280_v24, 0.0  ;;  %v2284_v35 = vadd.f32 %v2283_v8, %v3941_v59  ;;  %v2285_v55 = vpop.f32.mrb[51].mxu1 }
 0x242   :  { %v1707_v9 = vrot.slane %v1700_v26, %v3907_v57  ;;  %v2017_v48 = vrot.slane %v2016_v31, 4  ;;  %v2299_v53 = vmax.f32 %v2282_v12, 0.0  ;;  %v2286_v43 = vadd.f32 %v2285_v55, %v3941_v59 }
 0x243   :  { %v2009_v6 = vadd.f32 %v2008_v33, %v2007_v4  ;;  %v2300_v32 = vmax.f32 %v2284_v35, 0.0  ;;  %v2333_v60 = vmul.f32 %v3990_v1, %v2298_v28 }
 0x244   :  { %v1714_v62 = vrot.slane %v1707_v9, %v3907_v57  ;;  %v2018_v16 = vadd.f32 %v2017_v48, %v2016_v31  ;;  %v2301_v41 = vmax.f32 %v2286_v43, 0.0  ;;  %v2334_v11 = vmul.f32 %v3990_v1, %v2299_v53 }
 0x245   :  { %v2010_v52 = vrot.slane %v2009_v6, 2  ;;  %v2335_v38 = vmul.f32 %v4001_v13, %v2300_v32 }
 0x246   :  { %1717 = vst.msk [vmem:[#allocation4 + $0x4] ss:$8 sm:$0x3] %vm3920_vm1, %v1714_v62  ;;  %v2019_v40 = vrot.slane %v2018_v16, 2  ;;  %v2336_v45 = vmul.f32 %v4001_v13, %v2301_v41  ;;  %v2289_v59 = vpop.f32.mrb[52].mxu1 }
 0x247   :  { %v2011_v0 = vadd.f32 %v2010_v52, %v2009_v6  ;;  %v2341_v47 = vadd.f32 %v2335_v38, %v2333_v60  ;;  %v2290_v2 = vadd.f32 %v2289_v59, %v3954_v50  ;;  %v2291_v49 = vpop.f32.mrb[53].mxu1  ;;  %v2667_v6 = vpop.permute.xlu0 %2666 }
 0x248   :  { %v2020_v54 = vadd.f32 %v2019_v40, %v2018_v16  ;;  %v2350_v17 = vadd.f32 %v2336_v45, %v2334_v11  ;;  %v2292_v21 = vadd.f32 %v2291_v49, %v3954_v50  ;;  %v2293_v23 = vpop.f32.mrb[54].mxu1 }
 0x249   :  { %v2012_v51 = vrot.slane %v2011_v0, 1  ;;  %v2302_v14 = vmax.f32 %v2290_v2, 0.0  ;;  %v2294_v56 = vadd.f32 %v2293_v23, %v3988_v63  ;;  %v2295_v46 = vpop.f32.mrb[55].mxu1 }
 0x24a   :  { %v2021_v1 = vrot.slane %v2020_v54, 1  ;;  %v2303_v15 = vmax.f32 %v2292_v21, 0.0  ;;  %v2296_v13 = vadd.f32 %v2295_v46, %v3988_v63 }
 0x24b   :  { %v2013_v19 = vadd.f32 %v2012_v51, %v2011_v0  ;;  %v2337_v22 = vmul.f32 %v4025_v36, %v2302_v14  ;;  %v2304_v37 = vmax.f32 %v2294_v56, 0.0 }
 0x24c   :  { %v2022_v58 = vadd.f32 %v2021_v1, %v2020_v54  ;;  %v2338_v34 = vmul.f32 %v4025_v36, %v2303_v15  ;;  %v2305_v50 = vmax.f32 %v2296_v13, 0.0 }
 0x24d   :  { %v2032_v30 = vadd.f32 %v2031_v20, %v2013_v19  ;;  %v2342_v4 = vadd.f32 %v2341_v47, %v2337_v22  ;;  %v2339_v24 = vmul.f32 %v2331_v10, %v2304_v37 }
 0x24e   :  { %v2033_v39 = vadd.f32 %v2031_v20, %v2022_v58  ;;  %v2351_v26 = vadd.f32 %v2350_v17, %v2338_v34  ;;  %v2340_v31 = vmul.f32 %v2331_v10, %v2305_v50  ;;  %v2615_v12 = vpop.f32.mrb[56].mxu1  ;;  %v2362_v17 = vpop.permute.xlu0 %2361 }
 0x24f   :  { %v2343_v8 = vadd.f32 %v2342_v4, %v2339_v24  ;;  %v2616_v63 = vadd.f32 %v2615_v12, %v3944_v3  ;;  %v2617_v33 = vpop.f32.mrb[57].mxu1  ;;  %v2367_v20 = vrot.slane %v2362_v17, %v3892_v25 }
 0x250   :  { %v2036_v28 = vcombine.low %v2032_v30, %v2033_v39  ;;  %v2352_v35 = vadd.f32 %v2351_v26, %v2340_v31  ;;  %v2618_v55 = vadd.f32 %v2617_v33, %v3944_v3  ;;  %v2619_v9 = vpop.f32.mrb[58].mxu1 }
 0x251   :  { %v2344_v48 = vrot.slane %v2343_v8, 4  ;;  %v2634_v53 = vmax.f32 %v2616_v63, 0.0  ;;  %v2620_v36 = vadd.f32 %v2619_v9, %v3951_v7  ;;  %v2621_v43 = vpop.f32.mrb[59].mxu1 }
 0x252   :  { %v2043_v32 = vrot.slane %v2036_v28, %v3907_v57  ;;  %v2353_v62 = vrot.slane %v2352_v35, 4  ;;  %v2635_v10 = vmax.f32 %v2618_v55, 0.0  ;;  %v2622_v16 = vadd.f32 %v2621_v43, %v3951_v7 }
 0x253   :  { %v2345_v41 = vadd.f32 %v2344_v48, %v2343_v8  ;;  %v2636_v52 = vmax.f32 %v2620_v36, 0.0  ;;  %v2669_v11 = vmul.f32 %v4013_v18, %v2634_v53  ;;  %v2698_v53 = vpop.permute.xlu1 %2697 }
 0x254   :  { %v2050_v60 = vrot.slane %v2043_v32, %v3907_v57  ;;  %v2354_v38 = vadd.f32 %v2353_v62, %v2352_v35  ;;  %v2637_v40 = vmax.f32 %v2622_v16, 0.0  ;;  %v2670_v0 = vmul.f32 %v4013_v18, %v2635_v10 }
 0x255   :  { %v2346_v3 = vrot.slane %v2345_v41, 2  ;;  %v2671_v45 = vmul.f32 %v4016_v29, %v2636_v52  ;;  %v2703_v32 = vrot.slane %v2698_v53, %v3892_v25 }
 0x256   :  { %2053 = vst.msk [vmem:[#allocation4 + $0x5] ss:$8 sm:$0x3] %vm3920_vm1, %v2050_v60  ;;  %v2355_v59 = vrot.slane %v2354_v38, 2  ;;  %v2672_v47 = vmul.f32 %v4016_v29, %v2637_v40  ;;  %v2625_v7 = vpop.f32.mrb[60].mxu1 }
 0x257   :  { %v2347_v2 = vadd.f32 %v2346_v3, %v2345_v41  ;;  %v2677_v49 = vadd.f32 %v2671_v45, %v2669_v11  ;;  %v2626_v61 = vadd.f32 %v2625_v7, %v3965_v44  ;;  %v2627_v54 = vpop.f32.mrb[61].mxu1 }
 0x258   :  { %v2356_v21 = vadd.f32 %v2355_v59, %v2354_v38  ;;  %v2686_v23 = vadd.f32 %v2672_v47, %v2670_v0  ;;  %v2628_v51 = vadd.f32 %v2627_v54, %v3965_v44  ;;  %v2629_v14 = vpop.f32.mrb[62].mxu1 }
 0x259   :  { %v2348_v56 = vrot.slane %v2347_v2, 1  ;;  %v2638_v46 = vmax.f32 %v2626_v61, 0.0  ;;  %v2630_v1 = vadd.f32 %v2629_v14, %v4004_v5  ;;  %v2631_v15 = vpop.f32.mrb[63].mxu1 }
 0x25a   :  { %v2357_v18 = vrot.slane %v2356_v21, 1  ;;  %v2639_v13 = vmax.f32 %v2628_v51, 0.0  ;;  %v2632_v29 = vadd.f32 %v2631_v15, %v4004_v5 }
 0x25b   :  { %v2349_v19 = vadd.f32 %v2348_v56, %v2347_v2  ;;  %v2673_v22 = vmul.f32 %v4037_v27, %v2638_v46  ;;  %v2640_v37 = vmax.f32 %v2630_v1, 0.0 }
 0x25c   :  { %v2358_v58 = vadd.f32 %v2357_v18, %v2356_v21  ;;  %v2674_v34 = vmul.f32 %v4037_v27, %v2639_v13  ;;  %v2641_v44 = vmax.f32 %v2632_v29, 0.0 }
 0x25d   :  { %v2368_v50 = vadd.f32 %v2367_v20, %v2349_v19  ;;  %v2678_v30 = vadd.f32 %v2677_v49, %v2673_v22  ;;  %v2675_v4 = vmul.f32 %v2667_v6, %v2640_v37 }
 0x25e   :  { %v2369_v24 = vadd.f32 %v2367_v20, %v2358_v58  ;;  %v2687_v39 = vadd.f32 %v2686_v23, %v2674_v34  ;;  %v2676_v26 = vmul.f32 %v2667_v6, %v2641_v44 }
 0x25f   :  { %v2679_v31 = vadd.f32 %v2678_v30, %v2675_v4 }
 0x260   :  { %v2372_v12 = vcombine.low %v2368_v50, %v2369_v24  ;;  %v2688_v8 = vadd.f32 %v2687_v39, %v2676_v26 }
 0x261   :  { %v2680_v5 = vrot.slane %v2679_v31, 4 }
 0x262   :  { %v2379_v63 = vrot.slane %v2372_v12, %v3907_v57  ;;  %v2689_v33 = vrot.slane %v2688_v8, 4 }
 0x263   :  { %v2681_v28 = vadd.f32 %v2680_v5, %v2679_v31 }
 0x264   :  { %v2386_v35 = vrot.slane %v2379_v63, %v3907_v57  ;;  %v2690_v55 = vadd.f32 %v2689_v33, %v2688_v8 }
 0x265   :  { %v2682_v9 = vrot.slane %v2681_v28, 2 }
 0x266   :  { %2389 = vst.msk [vmem:[#allocation4 + $0x6] ss:$8 sm:$0x3] %vm3920_vm1, %v2386_v35  ;;  %v2691_v27 = vrot.slane %v2690_v55, 2 }
 0x267   :  { %v2683_v48 = vadd.f32 %v2682_v9, %v2681_v28 }
 0x268   :  { %v2692_v36 = vadd.f32 %v2691_v27, %v2690_v55 }
 0x269   :  { %v2684_v43 = vrot.slane %v2683_v48, 1 }
 0x26a   :  { %v2693_v6 = vrot.slane %v2692_v36, 1 }
 0x26b   :  { %v2685_v62 = vadd.f32 %v2684_v43, %v2683_v48 }
 0x26c   :  { %v2694_v10 = vadd.f32 %v2693_v6, %v2692_v36 }
 0x26d   :  { %v2704_v16 = vadd.f32 %v2703_v32, %v2685_v62 }
 0x26e   :  { %v2705_v41 = vadd.f32 %v2703_v32, %v2694_v10 }
 0x270   :  { %v2708_v52 = vcombine.low %v2704_v16, %v2705_v41 }
 0x272   :  { %v2715_v60 = vrot.slane %v2708_v52, %v3907_v57 }
 0x274   :  { %v2722_v38 = vrot.slane %v2715_v60, %v3907_v57 }
 0x276   :  { %2725 = vst.msk [vmem:[#allocation4 + $0x7] ss:$8 sm:$0x3] %vm3920_vm1, %v2722_v38 }
 0x277   :  { %3182 = shalt.err (!%p3179_p9)
}
 0x278   :  { %s3183_s10 = scalar_lea.hbm %s4106_s8, 256 }
 0x279   :  { %p3184_p10 = scmp.ne.s32.totalorder %s4106_s8, %s3183_s10  ;;  %p3187_p11 = scmp.lt.u32.totalorder %s3183_s10, %s4106_s8 }
 0x27b   :  { %p3189_p12 = pnand %p3187_p11, %p3184_p10 }
 0x27d   :  { %3192 = shalt.err (!%p3189_p12)
}
 0x27e   :  { %2736 = dma.vmem_to_hbm [thread:$0]  %s2734_s11, 256, %s4106_s8, [#allocation5]  }
 0x27f   :  { %3195 = dma.done.wait [#allocation5], 256  }
 0x280   :  { %3196 = vsyncadd [#allocation5], 4294967040 }
 0x281   :  { %2740 = vsyncpa [#allocation5], 1 }

</bundles_post_ra>
